<compile_context>
chip_gen: v5e
topology: v5e:2x2
jax: 0.10.0
libtpu: 0.0.40
codegen_flags: <defaults>
</compile_context>

<pallas_src>
import math

import jax
import jax.numpy as jnp
from jax import lax
from jax.experimental import pallas as pl
from jax.experimental.pallas import tpu as pltpu  # referenced in real-dims NOTE

# Shrunken but shape-consistent config (module defaults are 1024/768/257/77;
# num_heads=8 and the dataflow are preserved).
D_IN = 64        # input_dim
D_OUT = 128      # output_dim (divisible by 8 heads -> head_dim 16)
S_IN = 16        # input_seq_len
S_OUT = 8        # output_seq_len
N_HEADS = 8
HEAD_DIM = D_OUT // N_HEADS
BATCH = 2

ROWS_IN = BATCH * S_IN      # 32  (batch folded into rows)
ROWS_OUT = BATCH * S_OUT    # 16


# ----------------------------- fused kernel ---------------------------------

def _fused_kernel(x_ref, q_ref,
                  wq_ref, bq_ref, wk_ref, bk_ref, wv_ref, bv_ref,
                  wo_ref, bo_ref, w1_ref, b1_ref, w2_ref, b2_ref,
                  o_ref):
    """(folded proj ->) MHA -> MLP, whole batch in one invocation."""
    f32 = jnp.float32

    # ---- full-width, lane-dense projections (batch folded into rows) --------
    # 1/sqrt(head_dim) is folded into wq/bq; projection_layer into wk/wv/bk/bv.
    Q = jnp.dot(q_ref[...], wq_ref[...], preferred_element_type=f32) + bq_ref[...]  # [B*S_OUT, D]
    K = jnp.dot(x_ref[...], wk_ref[...], preferred_element_type=f32) + bk_ref[...]  # [B*S_IN,  D]
    V = jnp.dot(x_ref[...], wv_ref[...], preferred_element_type=f32) + bv_ref[...]  # [B*S_IN,  D]

    # Split batch back out (leading-dim split: free, no data movement).
    Q3 = Q.reshape(BATCH, S_OUT, D_OUT)
    K3 = K.reshape(BATCH, S_IN, D_OUT)
    V3 = V.reshape(BATCH, S_IN, D_OUT)

    # ---- per-head attention ------------------------------------------------
    # Scores/ctx are ~4% of the kernel FLOPs; HEAD_DIM=16 contractions are
    # inherent to MHA, so static 16-lane slices + small batched dots are fine.
    ctx_heads = []
    for h in range(N_HEADS):                       # unrolled at trace time
        lo = h * HEAD_DIM
        qh = Q3[:, :, lo:lo + HEAD_DIM]            # [B, S_OUT, HEAD_DIM]
        kh = K3[:, :, lo:lo + HEAD_DIM]            # [B, S_IN,  HEAD_DIM]
        vh = V3[:, :, lo:lo + HEAD_DIM]

        s = lax.dot_general(qh, kh, (((2,), (2,)), ((0,), (0,))),
                            preferred_element_type=f32)        # [B, S_OUT, S_IN]
        s = s - jnp.max(s, axis=-1, keepdims=True)
        p = jnp.exp(s)
        p = p / jnp.sum(p, axis=-1, keepdims=True)              # exact division
        ctx_heads.append(
            lax.dot_general(p, vh, (((2,), (1,)), ((0,), (0,))),
                            preferred_element_type=f32))        # [B, S_OUT, HEAD_DIM]

    # Repack heads once along lanes -> one full-width output projection.
    ctx = jnp.concatenate(ctx_heads, axis=-1).reshape(ROWS_OUT, D_OUT)  # [B*S_OUT, D]

    attn = jnp.dot(ctx, wo_ref[...], preferred_element_type=f32) + bo_ref[...]

    # MLP: fc1 -> ReLU -> fc2.
    h1 = jnp.dot(attn, w1_ref[...], preferred_element_type=f32) + b1_ref[...]
    h1 = jnp.maximum(h1, 0.0)
    o_ref[...] = jnp.dot(h1, w2_ref[...], preferred_element_type=f32) + b2_ref[...]


# ------------------------------- wrapper -------------------------------------

def _mm(a, b):
    return jnp.matmul(a, b, precision=jax.lax.Precision.HIGHEST)


def embedding_optimizer_forward(x, query, params):
    """Fused forward. x: [B, S_IN, D_IN], query: [B, S_OUT, D_OUT]."""
    B = x.shape[0]
    assert B == BATCH

    # --- one-time parameter prep (plain XLA ops, not per-token work) ---------
    # Fold projection_layer into K/V projections (exact up to fp reordering).
    wk_f = _mm(params["w_proj"], params["wk"])                       # [D_IN, D_OUT]
    bk_f = _mm(params["b_proj"], params["wk"]) + params["bk"]        # [D_OUT]
    wv_f = _mm(params["w_proj"], params["wv"])
    bv_f = _mm(params["b_proj"], params["wv"]) + params["bv"]

    # Fold softmax scale into the Q projection.
    scale = 1.0 / math.sqrt(HEAD_DIM)
    wq_s = params["wq"] * scale
    bq_s = params["bq"] * scale

    # Fold batch into rows: all big matmuls become lane-dense 128-wide.
    x2 = x.reshape(ROWS_IN, D_IN)
    q2 = query.reshape(ROWS_OUT, D_OUT)

    def spec(shape):
        # gridless call: whole-array block resident in VMEM
        return pl.BlockSpec(shape, lambda: (0, 0))

    operands = (
        x2, q2,
        wq_s, bq_s.reshape(1, D_OUT),
        wk_f, bk_f.reshape(1, D_OUT),
        wv_f, bv_f.reshape(1, D_OUT),
        params["wo"], params["bo"].reshape(1, D_OUT),
        params["w1"], params["b1"].reshape(1, D_OUT),
        params["w2"], params["b2"].reshape(1, D_OUT),
    )

    out = pl.pallas_call(
        _fused_kernel,
        out_shape=jax.ShapeDtypeStruct((ROWS_OUT, D_OUT), jnp.float32),
        grid=(),
        in_specs=[spec(op.shape) for op in operands],
        out_specs=spec((ROWS_OUT, D_OUT)),
    )(*operands)
    return out.reshape(B, S_OUT, D_OUT)


# --------------------------- reference & params -------------------------------

def reference_forward(x, query, params):
    """Pure-JAX reference implementing the original (unfolded) module math."""
    B = x.shape[0]
    xp = _mm(x, params["w_proj"]) + params["b_proj"]            # projection_layer
    q = _mm(query, params["wq"]) + params["bq"]
    k = _mm(xp, params["wk"]) + params["bk"]
    v = _mm(xp, params["wv"]) + params["bv"]

    def split(t):
        return t.reshape(B, t.shape[1], N_HEADS, HEAD_DIM).transpose(0, 2, 1, 3)

    qh, kh, vh = split(q), split(k), split(v)
    s = jnp.einsum("bhqd,bhkd->bhqk", qh, kh,
                   precision=jax.lax.Precision.HIGHEST) / math.sqrt(HEAD_DIM)
    p = jax.nn.softmax(s, axis=-1)
    ctx = jnp.einsum("bhqk,bhkd->bhqd", p, vh,
                     precision=jax.lax.Precision.HIGHEST)
    attn = ctx.transpose(0, 2, 1, 3).reshape(B, S_OUT, D_OUT)
    attn = _mm(attn, params["wo"]) + params["bo"]
    h = jnp.maximum(_mm(attn, params["w1"]) + params["b1"], 0.0)
    return _mm(h, params["w2"]) + params["b2"]


def init_params(key):
    ks = jax.random.split(key, 14)
    s = 0.1
    f32 = jnp.float32
    return {
        "w_proj": s * jax.random.normal(ks[0], (D_IN, D_OUT), f32),
        "b_proj": s * jax.random.normal(ks[1], (D_OUT,), f32),
        "wq": s * jax.random.normal(ks[2], (D_OUT, D_OUT), f32),
        "bq": s * jax.random.normal(ks[3], (D_OUT,), f32),
        "wk": s * jax.random.normal(ks[4], (D_OUT, D_OUT), f32),
        "bk": s * jax.random.normal(ks[5], (D_OUT,), f32),
        "wv": s * jax.random.normal(ks[6], (D_OUT, D_OUT), f32),
        "bv": s * jax.random.normal(ks[7], (D_OUT,), f32),
        "wo": s * jax.random.normal(ks[8], (D_OUT, D_OUT), f32),
        "bo": s * jax.random.normal(ks[9], (D_OUT,), f32),
        "w1": s * jax.random.normal(ks[10], (D_OUT, D_OUT), f32),
        "b1": s * jax.random.normal(ks[11], (D_OUT,), f32),
        "w2": s * jax.random.normal(ks[12], (D_OUT, D_OUT), f32),
        "b2": s * jax.random.normal(ks[13], (D_OUT,), f32),
    }


if __name__ == "__main__":
    key = jax.random.PRNGKey(0)
    k_x, k_params, k_query = jax.random.split(key, 3)

    x = jax.random.normal(k_x, (BATCH, S_IN, D_IN), dtype=jnp.float32)
    # TODO(synk): torch.randn draws a fresh query each forward (stateful RNG);
    # here it is a deterministic input riding the same fused kernel.
    query = jax.random.normal(k_query, (BATCH, S_OUT, D_OUT), dtype=jnp.float32)
    params = init_params(k_params)

    out = jax.block_until_ready(embedding_optimizer_forward(x, query, params))
    assert out.shape == (BATCH, S_OUT, D_OUT), out.shape
    assert bool(jnp.all(jnp.isfinite(out)))

    ref = reference_forward(x, query, params)
    max_err = float(jnp.max(jnp.abs(out - ref)))
    # Exact softmax division now; remaining delta is fp32 reassociation from
    # the W_proj / scale folds and MXU accumulation order (~1e-5 here).
    assert bool(jnp.allclose(out, ref, rtol=1e-3, atol=1e-3)), max_err

    print("KERNEL_OK")
</pallas_src>

<mosaic_0001>
module attributes {stable_mosaic.version = 11 : i64} {
  func.func @_fused_kernel(%arg0: memref<32x64xf32, #tpu.memory_space<vmem>>, %arg1: memref<16x128xf32, #tpu.memory_space<vmem>>, %arg2: memref<128x128xf32, #tpu.memory_space<vmem>>, %arg3: memref<1x128xf32, #tpu.memory_space<vmem>>, %arg4: memref<64x128xf32, #tpu.memory_space<vmem>>, %arg5: memref<1x128xf32, #tpu.memory_space<vmem>>, %arg6: memref<64x128xf32, #tpu.memory_space<vmem>>, %arg7: memref<1x128xf32, #tpu.memory_space<vmem>>, %arg8: memref<128x128xf32, #tpu.memory_space<vmem>>, %arg9: memref<1x128xf32, #tpu.memory_space<vmem>>, %arg10: memref<128x128xf32, #tpu.memory_space<vmem>>, %arg11: memref<1x128xf32, #tpu.memory_space<vmem>>, %arg12: memref<128x128xf32, #tpu.memory_space<vmem>>, %arg13: memref<1x128xf32, #tpu.memory_space<vmem>>, %arg14: memref<16x128xf32, #tpu.memory_space<vmem>>) attributes {dimension_semantics = [], scalar_prefetch = 0 : i64, scratch_operands = 0 : i64, tpu.core_type = #tpu.core_type<tc>} {
    %c0 = arith.constant 0 : index
    %c0_0 = arith.constant 0 : index
    %0 = vector.load %arg1[%c0, %c0_0] : memref<16x128xf32, #tpu.memory_space<vmem>>, vector<16x128xf32>
    %c0_1 = arith.constant 0 : index
    %c0_2 = arith.constant 0 : index
    %1 = vector.load %arg2[%c0_1, %c0_2] : memref<128x128xf32, #tpu.memory_space<vmem>>, vector<128x128xf32>
    %cst = arith.constant dense<0.000000e+00> : vector<16x128xf32>
    %2 = tpu.matmul %0, %1, %cst {dimension_numbers = #tpu.dot_dimension_numbers<[1], [0], [0], [1], [0, 0, 1, 1], [], []>} : vector<16x128xf32>, vector<128x128xf32>, vector<16x128xf32> -> vector<16x128xf32>
    %c0_3 = arith.constant 0 : index
    %c0_4 = arith.constant 0 : index
    %3 = vector.load %arg3[%c0_3, %c0_4] : memref<1x128xf32, #tpu.memory_space<vmem>>, vector<1x128xf32>
    %4 = vector.broadcast %3 : vector<1x128xf32> to vector<16x128xf32>
    %5 = arith.addf %2, %4 : vector<16x128xf32>
    %c0_5 = arith.constant 0 : index
    %c0_6 = arith.constant 0 : index
    %6 = vector.load %arg0[%c0_5, %c0_6] : memref<32x64xf32, #tpu.memory_space<vmem>>, vector<32x64xf32>
    %c0_7 = arith.constant 0 : index
    %c0_8 = arith.constant 0 : index
    %7 = vector.load %arg4[%c0_7, %c0_8] : memref<64x128xf32, #tpu.memory_space<vmem>>, vector<64x128xf32>
    %cst_9 = arith.constant dense<0.000000e+00> : vector<32x128xf32>
    %8 = tpu.matmul %6, %7, %cst_9 {dimension_numbers = #tpu.dot_dimension_numbers<[1], [0], [0], [1], [0, 0, 1, 1], [], []>} : vector<32x64xf32>, vector<64x128xf32>, vector<32x128xf32> -> vector<32x128xf32>
    %c0_10 = arith.constant 0 : index
    %c0_11 = arith.constant 0 : index
    %9 = vector.load %arg5[%c0_10, %c0_11] : memref<1x128xf32, #tpu.memory_space<vmem>>, vector<1x128xf32>
    %10 = vector.broadcast %9 : vector<1x128xf32> to vector<32x128xf32>
    %11 = arith.addf %8, %10 : vector<32x128xf32>
    %c0_12 = arith.constant 0 : index
    %c0_13 = arith.constant 0 : index
    %12 = vector.load %arg0[%c0_12, %c0_13] : memref<32x64xf32, #tpu.memory_space<vmem>>, vector<32x64xf32>
    %c0_14 = arith.constant 0 : index
    %c0_15 = arith.constant 0 : index
    %13 = vector.load %arg6[%c0_14, %c0_15] : memref<64x128xf32, #tpu.memory_space<vmem>>, vector<64x128xf32>
    %cst_16 = arith.constant dense<0.000000e+00> : vector<32x128xf32>
    %14 = tpu.matmul %12, %13, %cst_16 {dimension_numbers = #tpu.dot_dimension_numbers<[1], [0], [0], [1], [0, 0, 1, 1], [], []>} : vector<32x64xf32>, vector<64x128xf32>, vector<32x128xf32> -> vector<32x128xf32>
    %c0_17 = arith.constant 0 : index
    %c0_18 = arith.constant 0 : index
    %15 = vector.load %arg7[%c0_17, %c0_18] : memref<1x128xf32, #tpu.memory_space<vmem>>, vector<1x128xf32>
    %16 = vector.broadcast %15 : vector<1x128xf32> to vector<32x128xf32>
    %17 = arith.addf %14, %16 : vector<32x128xf32>
    %18 = vector.shape_cast %5 : vector<16x128xf32> to vector<2x8x128xf32>
    %19 = vector.shape_cast %11 : vector<32x128xf32> to vector<2x16x128xf32>
    %20 = vector.shape_cast %17 : vector<32x128xf32> to vector<2x16x128xf32>
    %21 = vector.extract_strided_slice %18 {offsets = [0, 0, 0], sizes = [2, 8, 16], strides = [1, 1, 1]} : vector<2x8x128xf32> to vector<2x8x16xf32>
    %22 = vector.extract_strided_slice %19 {offsets = [0, 0, 0], sizes = [2, 16, 16], strides = [1, 1, 1]} : vector<2x16x128xf32> to vector<2x16x16xf32>
    %23 = vector.extract_strided_slice %20 {offsets = [0, 0, 0], sizes = [2, 16, 16], strides = [1, 1, 1]} : vector<2x16x128xf32> to vector<2x16x16xf32>
    %cst_19 = arith.constant dense<0.000000e+00> : vector<2x8x16xf32>
    %24 = tpu.matmul %21, %22, %cst_19 {dimension_numbers = #tpu.dot_dimension_numbers<[2], [2], [1], [1], [0, 0, 0, 1, 1, 1], [0], [0]>} : vector<2x8x16xf32>, vector<2x16x16xf32>, vector<2x8x16xf32> -> vector<2x8x16xf32>
    %cst_20 = arith.constant dense<0xFF800000> : vector<2x8xf32>
    %25 = vector.multi_reduction <maximumf>, %24, %cst_20 [2] : vector<2x8x16xf32> to vector<2x8xf32>
    %26 = vector.shape_cast %25 : vector<2x8xf32> to vector<2x8x1xf32>
    %27 = vector.broadcast %26 : vector<2x8x1xf32> to vector<2x8x16xf32>
    %28 = arith.subf %24, %27 : vector<2x8x16xf32>
    %29 = math.exp %28 : vector<2x8x16xf32>
    %cst_21 = arith.constant dense<0.000000e+00> : vector<2x8xf32>
    %30 = vector.multi_reduction <add>, %29, %cst_21 [2] : vector<2x8x16xf32> to vector<2x8xf32>
    %31 = vector.shape_cast %30 : vector<2x8xf32> to vector<2x8x1xf32>
    %32 = vector.broadcast %31 : vector<2x8x1xf32> to vector<2x8x16xf32>
    %33 = arith.divf %29, %32 : vector<2x8x16xf32>
    %cst_22 = arith.constant dense<0.000000e+00> : vector<2x8x16xf32>
    %34 = tpu.matmul %33, %23, %cst_22 {dimension_numbers = #tpu.dot_dimension_numbers<[2], [1], [1], [2], [0, 0, 0, 1, 1, 2], [0], [0]>} : vector<2x8x16xf32>, vector<2x16x16xf32>, vector<2x8x16xf32> -> vector<2x8x16xf32>
    %35 = vector.extract_strided_slice %18 {offsets = [0, 0, 16], sizes = [2, 8, 16], strides = [1, 1, 1]} : vector<2x8x128xf32> to vector<2x8x16xf32>
    %36 = vector.extract_strided_slice %19 {offsets = [0, 0, 16], sizes = [2, 16, 16], strides = [1, 1, 1]} : vector<2x16x128xf32> to vector<2x16x16xf32>
    %37 = vector.extract_strided_slice %20 {offsets = [0, 0, 16], sizes = [2, 16, 16], strides = [1, 1, 1]} : vector<2x16x128xf32> to vector<2x16x16xf32>
    %cst_23 = arith.constant dense<0.000000e+00> : vector<2x8x16xf32>
    %38 = tpu.matmul %35, %36, %cst_23 {dimension_numbers = #tpu.dot_dimension_numbers<[2], [2], [1], [1], [0, 0, 0, 1, 1, 1], [0], [0]>} : vector<2x8x16xf32>, vector<2x16x16xf32>, vector<2x8x16xf32> -> vector<2x8x16xf32>
    %cst_24 = arith.constant dense<0xFF800000> : vector<2x8xf32>
    %39 = vector.multi_reduction <maximumf>, %38, %cst_24 [2] : vector<2x8x16xf32> to vector<2x8xf32>
    %40 = vector.shape_cast %39 : vector<2x8xf32> to vector<2x8x1xf32>
    %41 = vector.broadcast %40 : vector<2x8x1xf32> to vector<2x8x16xf32>
    %42 = arith.subf %38, %41 : vector<2x8x16xf32>
    %43 = math.exp %42 : vector<2x8x16xf32>
    %cst_25 = arith.constant dense<0.000000e+00> : vector<2x8xf32>
    %44 = vector.multi_reduction <add>, %43, %cst_25 [2] : vector<2x8x16xf32> to vector<2x8xf32>
    %45 = vector.shape_cast %44 : vector<2x8xf32> to vector<2x8x1xf32>
    %46 = vector.broadcast %45 : vector<2x8x1xf32> to vector<2x8x16xf32>
    %47 = arith.divf %43, %46 : vector<2x8x16xf32>
    %cst_26 = arith.constant dense<0.000000e+00> : vector<2x8x16xf32>
    %48 = tpu.matmul %47, %37, %cst_26 {dimension_numbers = #tpu.dot_dimension_numbers<[2], [1], [1], [2], [0, 0, 0, 1, 1, 2], [0], [0]>} : vector<2x8x16xf32>, vector<2x16x16xf32>, vector<2x8x16xf32> -> vector<2x8x16xf32>
    %49 = vector.extract_strided_slice %18 {offsets = [0, 0, 32], sizes = [2, 8, 16], strides = [1, 1, 1]} : vector<2x8x128xf32> to vector<2x8x16xf32>
    %50 = vector.extract_strided_slice %19 {offsets = [0, 0, 32], sizes = [2, 16, 16], strides = [1, 1, 1]} : vector<2x16x128xf32> to vector<2x16x16xf32>
    %51 = vector.extract_strided_slice %20 {offsets = [0, 0, 32], sizes = [2, 16, 16], strides = [1, 1, 1]} : vector<2x16x128xf32> to vector<2x16x16xf32>
    %cst_27 = arith.constant dense<0.000000e+00> : vector<2x8x16xf32>
    %52 = tpu.matmul %49, %50, %cst_27 {dimension_numbers = #tpu.dot_dimension_numbers<[2], [2], [1], [1], [0, 0, 0, 1, 1, 1], [0], [0]>} : vector<2x8x16xf32>, vector<2x16x16xf32>, vector<2x8x16xf32> -> vector<2x8x16xf32>
    %cst_28 = arith.constant dense<0xFF800000> : vector<2x8xf32>
    %53 = vector.multi_reduction <maximumf>, %52, %cst_28 [2] : vector<2x8x16xf32> to vector<2x8xf32>
    %54 = vector.shape_cast %53 : vector<2x8xf32> to vector<2x8x1xf32>
    %55 = vector.broadcast %54 : vector<2x8x1xf32> to vector<2x8x16xf32>
    %56 = arith.subf %52, %55 : vector<2x8x16xf32>
    %57 = math.exp %56 : vector<2x8x16xf32>
    %cst_29 = arith.constant dense<0.000000e+00> : vector<2x8xf32>
    %58 = vector.multi_reduction <add>, %57, %cst_29 [2] : vector<2x8x16xf32> to vector<2x8xf32>
    %59 = vector.shape_cast %58 : vector<2x8xf32> to vector<2x8x1xf32>
    %60 = vector.broadcast %59 : vector<2x8x1xf32> to vector<2x8x16xf32>
    %61 = arith.divf %57, %60 : vector<2x8x16xf32>
    %cst_30 = arith.constant dense<0.000000e+00> : vector<2x8x16xf32>
    %62 = tpu.matmul %61, %51, %cst_30 {dimension_numbers = #tpu.dot_dimension_numbers<[2], [1], [1], [2], [0, 0, 0, 1, 1, 2], [0], [0]>} : vector<2x8x16xf32>, vector<2x16x16xf32>, vector<2x8x16xf32> -> vector<2x8x16xf32>
    %63 = vector.extract_strided_slice %18 {offsets = [0, 0, 48], sizes = [2, 8, 16], strides = [1, 1, 1]} : vector<2x8x128xf32> to vector<2x8x16xf32>
    %64 = vector.extract_strided_slice %19 {offsets = [0, 0, 48], sizes = [2, 16, 16], strides = [1, 1, 1]} : vector<2x16x128xf32> to vector<2x16x16xf32>
    %65 = vector.extract_strided_slice %20 {offsets = [0, 0, 48], sizes = [2, 16, 16], strides = [1, 1, 1]} : vector<2x16x128xf32> to vector<2x16x16xf32>
    %cst_31 = arith.constant dense<0.000000e+00> : vector<2x8x16xf32>
    %66 = tpu.matmul %63, %64, %cst_31 {dimension_numbers = #tpu.dot_dimension_numbers<[2], [2], [1], [1], [0, 0, 0, 1, 1, 1], [0], [0]>} : vector<2x8x16xf32>, vector<2x16x16xf32>, vector<2x8x16xf32> -> vector<2x8x16xf32>
    %cst_32 = arith.constant dense<0xFF800000> : vector<2x8xf32>
    %67 = vector.multi_reduction <maximumf>, %66, %cst_32 [2] : vector<2x8x16xf32> to vector<2x8xf32>
    %68 = vector.shape_cast %67 : vector<2x8xf32> to vector<2x8x1xf32>
    %69 = vector.broadcast %68 : vector<2x8x1xf32> to vector<2x8x16xf32>
    %70 = arith.subf %66, %69 : vector<2x8x16xf32>
    %71 = math.exp %70 : vector<2x8x16xf32>
    %cst_33 = arith.constant dense<0.000000e+00> : vector<2x8xf32>
    %72 = vector.multi_reduction <add>, %71, %cst_33 [2] : vector<2x8x16xf32> to vector<2x8xf32>
    %73 = vector.shape_cast %72 : vector<2x8xf32> to vector<2x8x1xf32>
    %74 = vector.broadcast %73 : vector<2x8x1xf32> to vector<2x8x16xf32>
    %75 = arith.divf %71, %74 : vector<2x8x16xf32>
    %cst_34 = arith.constant dense<0.000000e+00> : vector<2x8x16xf32>
    %76 = tpu.matmul %75, %65, %cst_34 {dimension_numbers = #tpu.dot_dimension_numbers<[2], [1], [1], [2], [0, 0, 0, 1, 1, 2], [0], [0]>} : vector<2x8x16xf32>, vector<2x16x16xf32>, vector<2x8x16xf32> -> vector<2x8x16xf32>
    %77 = vector.extract_strided_slice %18 {offsets = [0, 0, 64], sizes = [2, 8, 16], strides = [1, 1, 1]} : vector<2x8x128xf32> to vector<2x8x16xf32>
    %78 = vector.extract_strided_slice %19 {offsets = [0, 0, 64], sizes = [2, 16, 16], strides = [1, 1, 1]} : vector<2x16x128xf32> to vector<2x16x16xf32>
    %79 = vector.extract_strided_slice %20 {offsets = [0, 0, 64], sizes = [2, 16, 16], strides = [1, 1, 1]} : vector<2x16x128xf32> to vector<2x16x16xf32>
    %cst_35 = arith.constant dense<0.000000e+00> : vector<2x8x16xf32>
    %80 = tpu.matmul %77, %78, %cst_35 {dimension_numbers = #tpu.dot_dimension_numbers<[2], [2], [1], [1], [0, 0, 0, 1, 1, 1], [0], [0]>} : vector<2x8x16xf32>, vector<2x16x16xf32>, vector<2x8x16xf32> -> vector<2x8x16xf32>
    %cst_36 = arith.constant dense<0xFF800000> : vector<2x8xf32>
    %81 = vector.multi_reduction <maximumf>, %80, %cst_36 [2] : vector<2x8x16xf32> to vector<2x8xf32>
    %82 = vector.shape_cast %81 : vector<2x8xf32> to vector<2x8x1xf32>
    %83 = vector.broadcast %82 : vector<2x8x1xf32> to vector<2x8x16xf32>
    %84 = arith.subf %80, %83 : vector<2x8x16xf32>
    %85 = math.exp %84 : vector<2x8x16xf32>
    %cst_37 = arith.constant dense<0.000000e+00> : vector<2x8xf32>
    %86 = vector.multi_reduction <add>, %85, %cst_37 [2] : vector<2x8x16xf32> to vector<2x8xf32>
    %87 = vector.shape_cast %86 : vector<2x8xf32> to vector<2x8x1xf32>
    %88 = vector.broadcast %87 : vector<2x8x1xf32> to vector<2x8x16xf32>
    %89 = arith.divf %85, %88 : vector<2x8x16xf32>
    %cst_38 = arith.constant dense<0.000000e+00> : vector<2x8x16xf32>
    %90 = tpu.matmul %89, %79, %cst_38 {dimension_numbers = #tpu.dot_dimension_numbers<[2], [1], [1], [2], [0, 0, 0, 1, 1, 2], [0], [0]>} : vector<2x8x16xf32>, vector<2x16x16xf32>, vector<2x8x16xf32> -> vector<2x8x16xf32>
    %91 = vector.extract_strided_slice %18 {offsets = [0, 0, 80], sizes = [2, 8, 16], strides = [1, 1, 1]} : vector<2x8x128xf32> to vector<2x8x16xf32>
    %92 = vector.extract_strided_slice %19 {offsets = [0, 0, 80], sizes = [2, 16, 16], strides = [1, 1, 1]} : vector<2x16x128xf32> to vector<2x16x16xf32>
    %93 = vector.extract_strided_slice %20 {offsets = [0, 0, 80], sizes = [2, 16, 16], strides = [1, 1, 1]} : vector<2x16x128xf32> to vector<2x16x16xf32>
    %cst_39 = arith.constant dense<0.000000e+00> : vector<2x8x16xf32>
    %94 = tpu.matmul %91, %92, %cst_39 {dimension_numbers = #tpu.dot_dimension_numbers<[2], [2], [1], [1], [0, 0, 0, 1, 1, 1], [0], [0]>} : vector<2x8x16xf32>, vector<2x16x16xf32>, vector<2x8x16xf32> -> vector<2x8x16xf32>
    %cst_40 = arith.constant dense<0xFF800000> : vector<2x8xf32>
    %95 = vector.multi_reduction <maximumf>, %94, %cst_40 [2] : vector<2x8x16xf32> to vector<2x8xf32>
    %96 = vector.shape_cast %95 : vector<2x8xf32> to vector<2x8x1xf32>
    %97 = vector.broadcast %96 : vector<2x8x1xf32> to vector<2x8x16xf32>
    %98 = arith.subf %94, %97 : vector<2x8x16xf32>
    %99 = math.exp %98 : vector<2x8x16xf32>
    %cst_41 = arith.constant dense<0.000000e+00> : vector<2x8xf32>
    %100 = vector.multi_reduction <add>, %99, %cst_41 [2] : vector<2x8x16xf32> to vector<2x8xf32>
    %101 = vector.shape_cast %100 : vector<2x8xf32> to vector<2x8x1xf32>
    %102 = vector.broadcast %101 : vector<2x8x1xf32> to vector<2x8x16xf32>
    %103 = arith.divf %99, %102 : vector<2x8x16xf32>
    %cst_42 = arith.constant dense<0.000000e+00> : vector<2x8x16xf32>
    %104 = tpu.matmul %103, %93, %cst_42 {dimension_numbers = #tpu.dot_dimension_numbers<[2], [1], [1], [2], [0, 0, 0, 1, 1, 2], [0], [0]>} : vector<2x8x16xf32>, vector<2x16x16xf32>, vector<2x8x16xf32> -> vector<2x8x16xf32>
    %105 = vector.extract_strided_slice %18 {offsets = [0, 0, 96], sizes = [2, 8, 16], strides = [1, 1, 1]} : vector<2x8x128xf32> to vector<2x8x16xf32>
    %106 = vector.extract_strided_slice %19 {offsets = [0, 0, 96], sizes = [2, 16, 16], strides = [1, 1, 1]} : vector<2x16x128xf32> to vector<2x16x16xf32>
    %107 = vector.extract_strided_slice %20 {offsets = [0, 0, 96], sizes = [2, 16, 16], strides = [1, 1, 1]} : vector<2x16x128xf32> to vector<2x16x16xf32>
    %cst_43 = arith.constant dense<0.000000e+00> : vector<2x8x16xf32>
    %108 = tpu.matmul %105, %106, %cst_43 {dimension_numbers = #tpu.dot_dimension_numbers<[2], [2], [1], [1], [0, 0, 0, 1, 1, 1], [0], [0]>} : vector<2x8x16xf32>, vector<2x16x16xf32>, vector<2x8x16xf32> -> vector<2x8x16xf32>
    %cst_44 = arith.constant dense<0xFF800000> : vector<2x8xf32>
    %109 = vector.multi_reduction <maximumf>, %108, %cst_44 [2] : vector<2x8x16xf32> to vector<2x8xf32>
    %110 = vector.shape_cast %109 : vector<2x8xf32> to vector<2x8x1xf32>
    %111 = vector.broadcast %110 : vector<2x8x1xf32> to vector<2x8x16xf32>
    %112 = arith.subf %108, %111 : vector<2x8x16xf32>
    %113 = math.exp %112 : vector<2x8x16xf32>
    %cst_45 = arith.constant dense<0.000000e+00> : vector<2x8xf32>
    %114 = vector.multi_reduction <add>, %113, %cst_45 [2] : vector<2x8x16xf32> to vector<2x8xf32>
    %115 = vector.shape_cast %114 : vector<2x8xf32> to vector<2x8x1xf32>
    %116 = vector.broadcast %115 : vector<2x8x1xf32> to vector<2x8x16xf32>
    %117 = arith.divf %113, %116 : vector<2x8x16xf32>
    %cst_46 = arith.constant dense<0.000000e+00> : vector<2x8x16xf32>
    %118 = tpu.matmul %117, %107, %cst_46 {dimension_numbers = #tpu.dot_dimension_numbers<[2], [1], [1], [2], [0, 0, 0, 1, 1, 2], [0], [0]>} : vector<2x8x16xf32>, vector<2x16x16xf32>, vector<2x8x16xf32> -> vector<2x8x16xf32>
    %119 = vector.extract_strided_slice %18 {offsets = [0, 0, 112], sizes = [2, 8, 16], strides = [1, 1, 1]} : vector<2x8x128xf32> to vector<2x8x16xf32>
    %120 = vector.extract_strided_slice %19 {offsets = [0, 0, 112], sizes = [2, 16, 16], strides = [1, 1, 1]} : vector<2x16x128xf32> to vector<2x16x16xf32>
    %121 = vector.extract_strided_slice %20 {offsets = [0, 0, 112], sizes = [2, 16, 16], strides = [1, 1, 1]} : vector<2x16x128xf32> to vector<2x16x16xf32>
    %cst_47 = arith.constant dense<0.000000e+00> : vector<2x8x16xf32>
    %122 = tpu.matmul %119, %120, %cst_47 {dimension_numbers = #tpu.dot_dimension_numbers<[2], [2], [1], [1], [0, 0, 0, 1, 1, 1], [0], [0]>} : vector<2x8x16xf32>, vector<2x16x16xf32>, vector<2x8x16xf32> -> vector<2x8x16xf32>
    %cst_48 = arith.constant dense<0xFF800000> : vector<2x8xf32>
    %123 = vector.multi_reduction <maximumf>, %122, %cst_48 [2] : vector<2x8x16xf32> to vector<2x8xf32>
    %124 = vector.shape_cast %123 : vector<2x8xf32> to vector<2x8x1xf32>
    %125 = vector.broadcast %124 : vector<2x8x1xf32> to vector<2x8x16xf32>
    %126 = arith.subf %122, %125 : vector<2x8x16xf32>
    %127 = math.exp %126 : vector<2x8x16xf32>
    %cst_49 = arith.constant dense<0.000000e+00> : vector<2x8xf32>
    %128 = vector.multi_reduction <add>, %127, %cst_49 [2] : vector<2x8x16xf32> to vector<2x8xf32>
    %129 = vector.shape_cast %128 : vector<2x8xf32> to vector<2x8x1xf32>
    %130 = vector.broadcast %129 : vector<2x8x1xf32> to vector<2x8x16xf32>
    %131 = arith.divf %127, %130 : vector<2x8x16xf32>
    %cst_50 = arith.constant dense<0.000000e+00> : vector<2x8x16xf32>
    %132 = tpu.matmul %131, %121, %cst_50 {dimension_numbers = #tpu.dot_dimension_numbers<[2], [1], [1], [2], [0, 0, 0, 1, 1, 2], [0], [0]>} : vector<2x8x16xf32>, vector<2x16x16xf32>, vector<2x8x16xf32> -> vector<2x8x16xf32>
    %133 = tpu.concatenate %34, %48, %62, %76, %90, %104, %118, %132 in 2 : vector<2x8x16xf32>, vector<2x8x16xf32>, vector<2x8x16xf32>, vector<2x8x16xf32>, vector<2x8x16xf32>, vector<2x8x16xf32>, vector<2x8x16xf32>, vector<2x8x16xf32> -> vector<2x8x128xf32>
    %134 = vector.shape_cast %133 : vector<2x8x128xf32> to vector<16x128xf32>
    %c0_51 = arith.constant 0 : index
    %c0_52 = arith.constant 0 : index
    %135 = vector.load %arg8[%c0_51, %c0_52] : memref<128x128xf32, #tpu.memory_space<vmem>>, vector<128x128xf32>
    %cst_53 = arith.constant dense<0.000000e+00> : vector<16x128xf32>
    %136 = tpu.matmul %134, %135, %cst_53 {dimension_numbers = #tpu.dot_dimension_numbers<[1], [0], [0], [1], [0, 0, 1, 1], [], []>} : vector<16x128xf32>, vector<128x128xf32>, vector<16x128xf32> -> vector<16x128xf32>
    %c0_54 = arith.constant 0 : index
    %c0_55 = arith.constant 0 : index
    %137 = vector.load %arg9[%c0_54, %c0_55] : memref<1x128xf32, #tpu.memory_space<vmem>>, vector<1x128xf32>
    %138 = vector.broadcast %137 : vector<1x128xf32> to vector<16x128xf32>
    %139 = arith.addf %136, %138 : vector<16x128xf32>
    %c0_56 = arith.constant 0 : index
    %c0_57 = arith.constant 0 : index
    %140 = vector.load %arg10[%c0_56, %c0_57] : memref<128x128xf32, #tpu.memory_space<vmem>>, vector<128x128xf32>
    %cst_58 = arith.constant dense<0.000000e+00> : vector<16x128xf32>
    %141 = tpu.matmul %139, %140, %cst_58 {dimension_numbers = #tpu.dot_dimension_numbers<[1], [0], [0], [1], [0, 0, 1, 1], [], []>} : vector<16x128xf32>, vector<128x128xf32>, vector<16x128xf32> -> vector<16x128xf32>
    %c0_59 = arith.constant 0 : index
    %c0_60 = arith.constant 0 : index
    %142 = vector.load %arg11[%c0_59, %c0_60] : memref<1x128xf32, #tpu.memory_space<vmem>>, vector<1x128xf32>
    %143 = vector.broadcast %142 : vector<1x128xf32> to vector<16x128xf32>
    %144 = arith.addf %141, %143 : vector<16x128xf32>
    %cst_61 = arith.constant 0.000000e+00 : f32
    %145 = vector.broadcast %cst_61 : f32 to vector<16x128xf32>
    %146 = arith.maximumf %144, %145 : vector<16x128xf32>
    %c0_62 = arith.constant 0 : index
    %c0_63 = arith.constant 0 : index
    %147 = vector.load %arg12[%c0_62, %c0_63] : memref<128x128xf32, #tpu.memory_space<vmem>>, vector<128x128xf32>
    %cst_64 = arith.constant dense<0.000000e+00> : vector<16x128xf32>
    %148 = tpu.matmul %146, %147, %cst_64 {dimension_numbers = #tpu.dot_dimension_numbers<[1], [0], [0], [1], [0, 0, 1, 1], [], []>} : vector<16x128xf32>, vector<128x128xf32>, vector<16x128xf32> -> vector<16x128xf32>
    %c0_65 = arith.constant 0 : index
    %c0_66 = arith.constant 0 : index
    %149 = vector.load %arg13[%c0_65, %c0_66] : memref<1x128xf32, #tpu.memory_space<vmem>>, vector<1x128xf32>
    %150 = vector.broadcast %149 : vector<1x128xf32> to vector<16x128xf32>
    %151 = arith.addf %148, %150 : vector<16x128xf32>
    %c0_67 = arith.constant 0 : index
    %c0_68 = arith.constant 0 : index
    %152 = vector.load %arg14[%c0_67, %c0_68] : memref<16x128xf32, #tpu.memory_space<vmem>>, vector<16x128xf32>
    tpu.vector_store %arg14[%c0_67, %c0_68], %151 {strides = array<i32>} : memref<16x128xf32, #tpu.memory_space<vmem>>, vector<16x128xf32>,
    return
  }
}

</mosaic_0001>

<bundles_post_ra>
// kernel: tpu_custom_call.1
= control target key start
LH: loop header
LB: loop body
LE: loop exit
PB: predicated region body
PF: predicated region fallthrough
CT: control target
= control target key end

     0   :  { %19 = vsyncpa [#allocation3], 0  ;;  %s3140_s0 = inlined_call_operand.hbm [shape: f32[32,64], index: 0, kind: input, shape index: {}]   ;;  %s3141_s1 = inlined_call_operand.hbm [shape: f32[16,128], index: 1, kind: input, shape index: {}]   ;;  %s3142_s2 = inlined_call_operand.hbm [shape: f32[128,128], index: 2, kind: input, shape index: {}]   ;;  %s3143_s3 = inlined_call_operand.vmem [shape: f32[1,128], index: 3, kind: input, shape index: {}]   ;;  %s3144_s4 = inlined_call_operand.hbm [shape: f32[64,128], index: 4, kind: input, shape index: {}]   ;;  %s3145_s5 = inlined_call_operand.vmem [shape: f32[1,128], index: 5, kind: input, shape index: {}]   ;;  %s3146_s6 = inlined_call_operand.hbm [shape: f32[64,128], index: 6, kind: input, shape index: {}]   ;;  %s3147_s7 = inlined_call_operand.vmem [shape: f32[1,128], index: 7, kind: input, shape index: {}]   ;;  %s3148_s8 = inlined_call_operand.hbm [shape: f32[128,128], index: 8, kind: input, shape index: {}]   ;;  %s3149_s9 = inlined_call_operand.vmem [shape: f32[1,128], index: 9, kind: input, shape index: {}]   ;;  %s3150_s10 = inlined_call_operand.hbm [shape: f32[128,128], index: 10, kind: input, shape index: {}]   ;;  %s3151_s11 = inlined_call_operand.vmem [shape: f32[1,128], index: 11, kind: input, shape index: {}]   ;;  %s3152_s12 = inlined_call_operand.hbm [shape: f32[128,128], index: 12, kind: input, shape index: {}]   ;;  %s3153_s13 = inlined_call_operand.vmem [shape: f32[1,128], index: 13, kind: input, shape index: {}]   ;;  %s3154_s14 = inlined_call_operand.hbm [shape: f32[16,128], index: 14, kind: output, shape index: {}]  }
   0x1   :  { %20 = vsyncpa [#allocation6], 0 }
   0x2   :  { %21 = vsyncpa [#allocation9], 0 }
   0x3   :  { %22 = vsyncpa [#allocation12], 0 }
   0x4   :  { %23 = vsyncpa [#allocation15], 0 }
   0x5   :  { %24 = vsyncpa [#allocation4], 0  ;;  %s42_s15 = sshll.u32 %s3141_s1, 4  ;;  %s2381_s16 = smov [#allocation5]   ;;  %s43_s15 = int_to_ptr.hbm [resolvable:$true] %s42_s15 }
   0x6   :  { %s44_s17 = sshll.u32 %s2381_s16, 4  ;;  %s70_s20 = sshll.u32 %s3144_s4, 4  ;;  %s45_s17 = int_to_ptr.vmem [resolvable:$true] %s44_s17  ;;  %s71_s20 = int_to_ptr.hbm [resolvable:$true] %s70_s20 }
   0x7   :  { %s2382_s21 = smov 128   ;;  %s2383_s22 = smov 8  }
   0x8   :  { %50 = dma.hbm_to_vmem [thread:$0]  %s43_s15, 256, %s45_s17, [#allocation6], %s2382_s21, %s2382_s21, %s2383_s22  }
   0x9   :  { %s2384_s23 = smov [#allocation8]   ;;  %s100_s1 = sshll.u32 %s3148_s8, 4  ;;  %s101_s1 = int_to_ptr.hbm [resolvable:$true] %s100_s1 }
   0xa   :  { %s72_s24 = sshll.u32 %s2384_s23, 4  ;;  %s29_s28 = sshll.u32 %s3140_s0, 4  ;;  %s73_s24 = int_to_ptr.vmem [resolvable:$true] %s72_s24  ;;  %s30_s28 = int_to_ptr.hbm [resolvable:$true] %s29_s28 }
   0xb   :  { %78 = dma.hbm_to_vmem [thread:$0]  %s71_s20, 1024, %s73_s24, [#allocation9], %s2382_s21, %s2382_s21, %s2383_s22  }
   0xc   :  { %s2385_s29 = smov [#allocation11]   ;;  %s2386_s15 = smov [#allocation2]  }
   0xd   :  { %s102_s30 = sshll.u32 %s2385_s29, 4  ;;  %s31_s8 = sshll.u32 %s2386_s15, 4  ;;  %s103_s30 = int_to_ptr.vmem [resolvable:$true] %s102_s30  ;;  %s32_s8 = int_to_ptr.vmem [resolvable:$true] %s31_s8 }
   0xe   :  { %108 = dma.hbm_to_vmem [thread:$0]  %s101_s1, 2048, %s103_s30, [#allocation12], %s2382_s21, %s2382_s21, %s2383_s22  }
   0xf   :  { %s55_s18 = sshll.u32 %s3142_s2, 4  ;;  %s85_s20 = sshll.u32 %s3146_s6, 4  ;;  %s56_s18 = int_to_ptr.hbm [resolvable:$true] %s55_s18  ;;  %s86_s20 = int_to_ptr.hbm [resolvable:$true] %s85_s20 }
  0x10   :  { %37 = dma.hbm_to_vmem [thread:$0]  %s30_s28, 512, %s32_s8, [#allocation3], %s2382_s21, %s2382_s21, %s2383_s22  }
  0x11   :  { %s2387_s23 = smov [#allocation7]   ;;  %s2388_s25 = smov [#allocation10]  }
  0x12   :  { %s57_s24 = sshll.u32 %s2387_s23, 4  ;;  %s87_s2 = sshll.u32 %s2388_s25, 4  ;;  %s58_s24 = int_to_ptr.vmem [resolvable:$true] %s57_s24  ;;  %s88_s2 = int_to_ptr.vmem [resolvable:$true] %s87_s2 }
  0x13   :  { %63 = dma.hbm_to_vmem [thread:$0]  %s56_s18, 2048, %s58_s24, [#allocation6], %s2382_s21, %s2382_s21, %s2383_s22  }
  0x14   :  { %s115_s4 = sshll.u32 %s3150_s10, 4  ;;  %s130_s28 = sshll.u32 %s3152_s12, 4  ;;  %s116_s4 = int_to_ptr.hbm [resolvable:$true] %s115_s4  ;;  %s131_s28 = int_to_ptr.hbm [resolvable:$true] %s130_s28 }
  0x15   :  { %93 = dma.hbm_to_vmem [thread:$0]  %s86_s20, 1024, %s88_s2, [#allocation9], %s2382_s21, %s2382_s21, %s2383_s22  }
  0x16   :  { %s2389_s29 = smov [#allocation13]   ;;  %s2390_s15 = smov [#allocation14]  }
  0x17   :  { %s117_s30 = sshll.u32 %s2389_s29, 4  ;;  %s132_s10 = sshll.u32 %s2390_s15, 4  ;;  %s118_s30 = int_to_ptr.vmem [resolvable:$true] %s117_s30  ;;  %s133_s10 = int_to_ptr.vmem [resolvable:$true] %s132_s10 }
  0x18   :  { %123 = dma.hbm_to_vmem [thread:$0]  %s116_s4, 2048, %s118_s30, [#allocation12], %s2382_s21, %s2382_s21, %s2383_s22  }
  0x19   :  { %138 = dma.hbm_to_vmem [thread:$0]  %s131_s28, 2048, %s133_s10, [#allocation15], %s2382_s21, %s2382_s21, %s2383_s22  }
  0x1a   :  { %2369 = dma.done.wait [#allocation3], 512  }
  0x1b   :  { %2370 = vsyncadd [#allocation3], 4294966784 }
  0x1c   :  { %2371 = dma.done.wait [#allocation6], 2304  }
  0x1d   :  { %2372 = vsyncadd [#allocation6], 4294964992 }
  0x1e   :  { %2373 = dma.done.wait [#allocation9], 2048  }
  0x1f   :  { %2374 = vsyncadd [#allocation9], 4294965248 }
  0x20   :  { %2375 = dma.done.wait [#allocation12], 4096  }
  0x21   :  { %2376 = vsyncadd [#allocation12], 4294963200 }
  0x22   :  { %2377 = dma.done.wait [#allocation15], 2048  }
  0x23   :  { %2378 = vsyncadd [#allocation15], 4294965248  ;;  %v190_v0 = vld [vmem:[#allocation7 + $0x78] sm:$0xff]  ;;  %v189_v2 = vld [vmem:[#allocation7 + $0x70] sm:$0xff]  ;;  %vm234_vm0 = vcmask 523264   ;;  %s2391_s16 = smov 112  }
  0x24   :  { %v229_v1 = vld [vmem:[#allocation8 + $0x38] sm:$0xff]  ;;  %195 = vmatpush.msra.mxu2 %v190_v0  ;;  %v228_v3 = vld [vmem:[#allocation8 + $0x30] sm:$0xff]  ;;  %v188_v4 = vld [vmem:[#allocation7 + $0x68] sm:$0xff]  ;;  %vm317_vm1 = vcmask 130048   ;;  %s2393_s17 = smov 80   ;;  %s2395_s19 = smov 48  }
  0x25   :  { %255 = vmatpush.msra.mxu0 %v229_v1  ;;  %1967 = vmatpush.msra.mxu1 %v229_v1  ;;  %v227_v5 = vld [vmem:[#allocation8 + $0x28] sm:$0xff]  ;;  %v187_v6 = vld [vmem:[#allocation7 + $0x60] sm:$0xff]  ;;  %v186_v8 = vld [vmem:[#allocation7 + $0x58] sm:$0xff]  ;;  %s2396_s20 = smov 32   ;;  %s2397_s23 = smov 16  }
  0x26   :  { %196 = vmatpush.msra.mxu2 %v189_v2  ;;  %v226_v7 = vld [vmem:[#allocation8 + $0x20] sm:$0xff]  ;;  %v225_v9 = vld [vmem:[#allocation8 + $0x18] sm:$0xff]  ;;  %v185_v10 = vld [vmem:[#allocation7 + $0x50] sm:$0xff]  ;;  %s2398_s6 = smov [#allocation16]  }
  0x27   :  { %256 = vmatpush.msra.mxu0 %v228_v3  ;;  %1968 = vmatpush.msra.mxu1 %v228_v3  ;;  %v224_v11 = vld [vmem:[#allocation8 + $0x10] sm:$0xff]  ;;  %v184_v12 = vld [vmem:[#allocation7 + $0x48] sm:$0xff]  ;;  %v183_v14 = vld [vmem:[#allocation7 + $0x40] sm:$0xff]  ;;  %s1876_s27 = sshll.u32 %s2398_s6, 4  ;;  %s1877_s27 = int_to_ptr.vmem [resolvable:$true] %s1876_s27 }
  0x28   :  { %197 = vmatpush.msra.mxu2 %v188_v4  ;;  %v223_v13 = vld [vmem:[#allocation8 + $0x8] sm:$0xff]  ;;  %v222_v15 = vld [vmem:[#allocation8] sm:$0xff]  ;;  %v2522_v16 = vld [vmem:[#allocation2] sm:$0xff] }
  0x29   :  { %257 = vmatpush.msra.mxu0 %v227_v5  ;;  %1969 = vmatpush.msra.mxu1 %v227_v5  ;;  %v2524_v17 = vld [vmem:[#allocation2 + $0x18] sm:$0xff]  ;;  %v182_v18 = vld [vmem:[#allocation7 + $0x38] sm:$0xff]  ;;  %v181_v19 = vld [vmem:[#allocation7 + $0x30] sm:$0xff] }
  0x2a   :  { %198 = vmatpush.msra.mxu2 %v187_v6  ;;  %v180_v20 = vld [vmem:[#allocation7 + $0x28] sm:$0xff]  ;;  %v179_v21 = vld [vmem:[#allocation7 + $0x20] sm:$0xff]  ;;  %v2530_v22 = vld [vmem:[#allocation2 + $0x8] sm:$0xff] }
  0x2b   :  { %258 = vmatpush.msra.mxu0 %v226_v7  ;;  %1970 = vmatpush.msra.mxu1 %v226_v7  ;;  %v178_v23 = vld [vmem:[#allocation7 + $0x18] sm:$0xff]  ;;  %v177_v24 = vld [vmem:[#allocation7 + $0x10] sm:$0xff]  ;;  %v176_v25 = vld [vmem:[#allocation7 + $0x8] sm:$0xff] }
  0x2c   :  { %199 = vmatpush.msra.mxu2 %v186_v8  ;;  %v175_v26 = vld [vmem:[#allocation7] sm:$0xff]  ;;  %v173_v27 = vld [vmem:[#allocation5] sm:$0xff]  ;;  %v174_v29 = vld [vmem:[#allocation5 + $0x8] sm:$0xff] }
  0x2d   :  { %259 = vmatpush.msra.mxu0 %v225_v9  ;;  %1971 = vmatpush.msra.mxu1 %v225_v9  ;;  %v2534_v28 = vld [vmem:[#allocation2 + $0x10] sm:$0xff]  ;;  %v2083_v30 = vld [vmem:[%s3145_s5] ss:$0 sm:$0xff]  ;;  %s2392_s5 = smov 96   ;;  %v283_v0 = vld [vmem:[#allocation10 + $0x38] sm:$0xff] }
  0x2e   :  { %200 = vmatpush.msra.mxu2 %v185_v10  ;;  %v2084_v39 = vld [vmem:[%s3143_s3] ss:$0 sm:$0xff]  ;;  %s2394_s3 = smov 64   ;;  %v281_v2 = vld [vmem:[#allocation10 + $0x28] sm:$0xff]  ;;  %v280_v3 = vld [vmem:[#allocation10 + $0x20] sm:$0xff] }
  0x2f   :  { %260 = vmatpush.msra.mxu0 %v224_v11  ;;  %1972 = vmatpush.msra.mxu1 %v224_v11  ;;  %v282_v1 = vld [vmem:[#allocation10 + $0x30] sm:$0xff]  ;;  %v279_v4 = vld [vmem:[#allocation10 + $0x18] sm:$0xff]  ;;  %v277_v6 = vld [vmem:[#allocation10 + $0x8] sm:$0xff] }
  0x30   :  { %201 = vmatpush.msra.mxu2 %v184_v12  ;;  %v278_v5 = vld [vmem:[#allocation10 + $0x10] sm:$0xff]  ;;  %v276_v7 = vld [vmem:[#allocation10] sm:$0xff] }
  0x31   :  { %261 = vmatpush.msra.mxu0 %v223_v13  ;;  %1973 = vmatpush.msra.mxu1 %v223_v13 }
  0x32   :  { %202 = vmatpush.msra.mxu2 %v183_v14 }
  0x33   :  { %262 = vmatpush.msra.mxu0 %v222_v15  ;;  %1974 = vmatpush.msra.mxu1 %v222_v15 }
  0x34   :  { %1895 = vmatmul.msk.f32.vlgmr.msra.gmra.mxu0 %vm234_vm0, %v2522_v16  ;;  %1898 = vmatmul.msk.f32.vlgmr.msra.gmra.mxu1 %vm234_vm0, %v2524_v17 }
  0x35   :  { %203 = vmatpush.msra.mxu2 %v182_v18 }
  0x37   :  { %204 = vmatpush.msra.mxu2 %v181_v19 }
  0x39   :  { %205 = vmatpush.msra.mxu2 %v180_v20 }
  0x3b   :  { %206 = vmatpush.msra.mxu2 %v179_v21 }
  0x3c   :  { %1896 = vmatmul.msk.f32.gmra.mxu0 %vm234_vm0, %v2530_v22 }
  0x3d   :  { %207 = vmatpush.msra.mxu2 %v178_v23 }
  0x3f   :  { %208 = vmatpush.msra.mxu2 %v177_v24 }
  0x41   :  { %209 = vmatpush.msra.mxu2 %v176_v25 }
  0x43   :  { %210 = vmatpush.msra.mxu2 %v175_v26 }
  0x44   :  { %211 = vmatmul.f32.vlgmr.msra.gmra.mxu2 %v173_v27  ;;  %1897 = vmatmul.msk.f32.gmra.mxu0 %vm234_vm0, %v2534_v28 }
  0x45   :  { %296 = vmatpush.msrb.mxu2 %v283_v0 }
  0x47   :  { %297 = vmatpush.msrb.mxu2 %v282_v1 }
  0x49   :  { %298 = vmatpush.msrb.mxu2 %v281_v2 }
  0x4b   :  { %299 = vmatpush.msrb.mxu2 %v280_v3 }
  0x4c   :  { %214 = vmatmul.f32.gmra.mxu2 %v174_v29 }
  0x4d   :  { %300 = vmatpush.msrb.mxu2 %v279_v4 }
  0x4f   :  { %301 = vmatpush.msrb.mxu2 %v278_v5 }
  0x51   :  { %302 = vmatpush.msrb.mxu2 %v277_v6 }
  0x53   :  { %303 = vmatpush.msrb.mxu2 %v276_v7 }
  0x54   :  { %1899 = vmatmul.msk.f32.vlgmr.msrb.gmra.mxu2 %vm234_vm0, %v2522_v16 }
  0x5c   :  { %1900 = vmatmul.msk.f32.gmra.mxu2 %vm234_vm0, %v2530_v22 }
  0x64   :  { %1901 = vmatmul.msk.f32.gmra.mxu2 %vm234_vm0, %v2534_v28 }
  0x6c   :  { %1902 = vmatmul.msk.f32.gmra.mxu2 %vm234_vm0, %v2524_v17 }
  0xb1   :  { %v264_v31 = vpop.f32.mrf.mxu0  ;;  %v273_v33 = vpop.f32.mrf.mxu1 }
  0xb2   :  { %v2541_v32 = vadd.f32 %v2083_v30, %v264_v31  ;;  %v2543_v34 = vadd.f32 %v2083_v30, %v273_v33 }
  0xb4   :  { %472 = vrot.lane.b32.xlu2 %v2541_v32, %s2391_s16  ;;  %506 = vrot.lane.b32.xlu1 %v2543_v34, %s2391_s16 }
  0xb9   :  { %v267_v35 = vpop.f32.mrf.mxu0 }
  0xba   :  { %v2549_v36 = vadd.f32 %v2083_v30, %v267_v35 }
  0xbc   :  { %1903 = vmatpush.xpose.msk.msra.mxu3 %vm317_vm1, %v2549_v36  ;;  %646 = vrot.lane.b32.xlu2 %v2541_v32, %s2392_s5 }
  0xbd   :  { %680 = vrot.lane.b32.xlu1 %v2543_v34, %s2392_s5  ;;  %818 = vrot.lane.b32.xlu0 %v2549_v36, %s2393_s17 }
  0xc0   :  { %1904 = vmatpush.xpose.msk.msra.mxu3 %vm317_vm1, %v2541_v32 }
  0xc1   :  { %v270_v37 = vpop.f32.mrf.mxu0 }
  0xc2   :  { %v2563_v38 = vadd.f32 %v2083_v30, %v270_v37 }
  0xc4   :  { %1906 = vmatpush.xpose.msk.msrb.mxu3 %vm317_vm1, %v2543_v34  ;;  %474 = vrot.lane.b32.xlu2 %v2549_v36, %s2391_s16 }
  0xc5   :  { %816 = vrot.lane.b32.xlu1 %v2541_v32, %s2393_s17 }
  0xc7   :  { %v212_v40 = vpop.f32.mrf.mxu2 }
  0xc8   :  { %1907 = vmatpush.xpose.msk.msrb.mxu3 %vm317_vm1, %v2563_v38  ;;  %v213_v41 = vadd.f32 %v2084_v39, %v212_v40 }
  0xca   :  { %470 = vrot.lane.b32.xlu0 %v213_v41, %s2391_s16  ;;  %1905 = vmatmul.msk.f32.vlgmr.msra.gmra.mxu3 %vm317_vm1, %v213_v41 }
  0xcc   :  { %648 = vrot.lane.b32.xlu2 %v2549_v36, %s2392_s5 }
  0xcd   :  { %850 = vrot.lane.b32.xlu1 %v2543_v34, %s2393_s17 }
  0xcf   :  { %v215_v42 = vpop.f32.mrf.mxu2 }
  0xd0   :  { %v2580_v43 = vadd.f32 %v2084_v39, %v215_v42 }
  0xd2   :  { %502 = vrot.lane.b32.xlu0 %v2580_v43, %s2391_s16  ;;  %1908 = vmatmul.msk.f32.vlgmr.msrb.gmra.mxu3 %vm317_vm1, %v2580_v43 }
  0xd4   :  { %504 = vrot.lane.b32.xlu2 %v2563_v38, %s2391_s16 }
  0xd5   :  { %986 = vrot.lane.b32.xlu1 %v2541_v32, %s2394_s3 }
  0xdc   :  { %678 = vrot.lane.b32.xlu2 %v2563_v38, %s2392_s5 }
  0xdd   :  { %1020 = vrot.lane.b32.xlu1 %v2543_v34, %s2394_s3 }
  0xe4   :  { %644 = vrot.lane.b32.xlu2 %v213_v41, %s2392_s5 }
  0xe5   :  { %1156 = vrot.lane.b32.xlu1 %v2541_v32, %s2395_s19 }
  0xec   :  { %814 = vrot.lane.b32.xlu2 %v213_v41, %s2393_s17 }
  0xed   :  { %1190 = vrot.lane.b32.xlu1 %v2543_v34, %s2395_s19 }
  0xf4   :  { %848 = vrot.lane.b32.xlu2 %v2563_v38, %s2393_s17 }
  0xf5   :  { %1326 = vrot.lane.b32.xlu1 %v2541_v32, %s2396_s20 }
  0xfc   :  { %984 = vrot.lane.b32.xlu2 %v213_v41, %s2394_s3 }
  0xfd   :  { %1360 = vrot.lane.b32.xlu1 %v2543_v34, %s2396_s20 }
 0x104   :  { %1018 = vrot.lane.b32.xlu2 %v2563_v38, %s2394_s3 }
 0x10c   :  { %1154 = vrot.lane.b32.xlu2 %v213_v41, %s2395_s19 }
 0x10e   :  { %v2610_v44 = vpop.permute.xlu2 %472 }
 0x114   :  { %1188 = vrot.lane.b32.xlu2 %v2563_v38, %s2395_s19 }
 0x116   :  { %v2614_v45 = vpop.permute.xlu2 %646 }
 0x11c   :  { %1324 = vrot.lane.b32.xlu2 %v213_v41, %s2396_s20 }
 0x11e   :  { %v2617_v46 = vpop.permute.xlu2 %474 }
 0x124   :  { %1358 = vrot.lane.b32.xlu2 %v2563_v38, %s2396_s20 }
 0x126   :  { %v2621_v47 = vpop.permute.xlu2 %648  ;;  %v507_v48 = vpop.permute.xlu1 %506 }
 0x127   :  { %1914 = vmatpush.xpose.msk.msrb.mxu1 %vm317_vm1, %v507_v48 }
 0x12c   :  { %1494 = vrot.lane.b32.xlu2 %v213_v41, %s2397_s23  ;;  %v305_v41 = vpop.f32.mrf.mxu2 }
 0x12e   :  { %v505_v49 = vpop.permute.xlu2 %504 }
 0x12f   :  { %v681_v50 = vpop.permute.xlu1 %680  ;;  %1915 = vmatpush.xpose.msk.msrb.mxu1 %vm317_vm1, %v505_v49  ;;  %v2627_v51 = vpop.permute.xlu0 %818 }
 0x130   :  { %1922 = vmatpush.xpose.msk.msrb.mxu0 %vm317_vm1, %v681_v50 }
 0x134   :  { %1526 = vrot.lane.b32.xlu2 %v2580_v43, %s2397_s23 }
 0x136   :  { %v679_v52 = vpop.permute.xlu2 %678 }
 0x137   :  { %v2631_v53 = vpop.permute.xlu1 %816  ;;  %1923 = vmatpush.xpose.msk.msrb.mxu0 %vm317_vm1, %v679_v52 }
 0x13c   :  { %v2634_v54 = vpop.permute.xlu0 %470 }
 0x13e   :  { %v2636_v55 = vpop.permute.xlu2 %644 }
 0x13f   :  { %v851_v56 = vpop.permute.xlu1 %850 }
 0x140   :  { %1930 = vmatpush.xpose.msk.msra.mxu0 %vm317_vm1, %v851_v56 }
 0x144   :  { %v503_v57 = vpop.permute.xlu0 %502 }
 0x145   :  { %1916 = vmatmul.msk.f32.vlgmr.msrb.gmra.mxu1 %vm317_vm1, %v503_v57 }
 0x146   :  { %v2640_v58 = vpop.permute.xlu2 %814 }
 0x147   :  { %v2673_v13 = vpop.permute.xlu1 %986 }
 0x14d   :  { %v344_v59 = vpop.f32.mrf.mxu3 }
 0x14e   :  { %v849_v60 = vpop.permute.xlu2 %848  ;;  %v376_v61 = vsel %vm317_vm1, %v344_v59, -inf }
 0x14f   :  { %1931 = vmatpush.xpose.msk.msra.mxu0 %vm317_vm1, %v849_v60  ;;  %377 = vmax.xlane.f32.xlu0 %v376_v61  ;;  %v1021_v19 = vpop.permute.xlu1 %1020 }
 0x155   :  { %v373_v62 = vpop.f32.mrf.mxu3 }
 0x156   :  { %v379_v63 = vsel %vm317_vm1, %v373_v62, -inf  ;;  %v2679_v17 = vpop.permute.xlu2 %984 }
 0x157   :  { %380 = vmax.xlane.f32.xlu0 %v379_v63  ;;  %v2691_v25 = vpop.permute.xlu1 %1156 }
 0x15e   :  { %v1019_v22 = vpop.permute.xlu2 %1018 }
 0x15f   :  { %v1191_v28 = vpop.permute.xlu1 %1190 }
 0x166   :  { %v2694_v26 = vpop.permute.xlu2 %1154 }
 0x167   :  { %v2703_v31 = vpop.permute.xlu1 %1326 }
 0x16b   :  { %676 = vrot.lane.b32.xlu0 %v2580_v43, %s2392_s5 }
 0x16e   :  { %v1189_v30 = vpop.permute.xlu2 %1188 }
 0x16f   :  { %v1361_v37 = vpop.permute.xlu1 %1360 }
 0x173   :  { %988 = vrot.lane.b32.xlu0 %v2549_v36, %s2394_s3 }
 0x176   :  { %v2707_v35 = vpop.permute.xlu2 %1324 }
 0x17b   :  { %846 = vrot.lane.b32.xlu0 %v2580_v43, %s2393_s17 }
 0x183   :  { %1158 = vrot.lane.b32.xlu0 %v2549_v36, %s2395_s19 }
 0x18b   :  { %1016 = vrot.lane.b32.xlu0 %v2580_v43, %s2394_s3 }
 0x193   :  { %1328 = vrot.lane.b32.xlu0 %v2549_v36, %s2396_s20 }
 0x19b   :  { %1186 = vrot.lane.b32.xlu0 %v2580_v43, %s2395_s19 }
 0x1a3   :  { %1498 = vrot.lane.b32.xlu0 %v2549_v36, %s2397_s23 }
 0x1ab   :  { %1356 = vrot.lane.b32.xlu0 %v2580_v43, %s2396_s20  ;;  %v308_v43 = vpop.f32.mrf.mxu2 }
 0x1b3   :  { %1528 = vrot.lane.b32.xlu0 %v2563_v38, %s2397_s23  ;;  %v1359_v38 = vpop.permute.xlu2 %1358  ;;  %v311_v50 = vpop.f32.mrf.mxu2 }
 0x1bb   :  { %v314_v52 = vpop.f32.mrf.mxu2 }
 0x1c2   :  { %v378_v8 = vpop.xlane.xlu0 %377  ;;  %v2685_v21 = vpop.f32.mrf.mxu1 }
 0x1c3   :  { %v382_v9 = vsub.f32 %v344_v59, %v378_v8  ;;  %v537_v23 = vsel %vm317_vm1, %v2685_v21, -inf }
 0x1c5   :  { %v384_v10 = vmul.f32 1.442695, %v382_v9 }
 0x1c7   :  { %2089 = vpow2.f32 %v384_v10 }
 0x1ca   :  { %v381_v11 = vpop.xlane.xlu0 %380 }
 0x1cb   :  { %v383_v12 = vsub.f32 %v373_v62, %v381_v11 }
 0x1cd   :  { %v2675_v14 = vpop.eup %2089  ;;  %v386_v15 = vmul.f32 1.442695, %v383_v12 }
 0x1ce   :  { %v388_v16 = vsel %vm317_vm1, %v2675_v14, 0.0 }
 0x1cf   :  { %2091 = vpow2.f32 %v386_v15  ;;  %389 = vadd.xlane.f32.xlu1 %v388_v16 }
 0x1d5   :  { %v2681_v18 = vpop.eup %2091 }
 0x1d6   :  { %v391_v20 = vsel %vm317_vm1, %v2681_v18, 0.0 }
 0x1d7   :  { %392 = vadd.xlane.f32.xlu1 %v391_v20 }
 0x1dd   :  { %538 = vmax.xlane.f32.xlu0 %v537_v23  ;;  %v677_v24 = vpop.permute.xlu0 %676 }
 0x1de   :  { %1924 = vmatmul.msk.f32.vlgmr.msrb.gmra.mxu0 %vm317_vm1, %v677_v24 }
 0x1df   :  { %1938 = vmatpush.xpose.msk.msrb.mxu0 %vm317_vm1, %v1021_v19 }
 0x1e3   :  { %1939 = vmatpush.xpose.msk.msrb.mxu0 %vm317_vm1, %v1019_v22 }
 0x1e5   :  { %v2696_v27 = vpop.permute.xlu0 %988 }
 0x1ed   :  { %v847_v29 = vpop.permute.xlu0 %846 }
 0x1ee   :  { %1932 = vmatmul.msk.f32.vlgmr.msra.gmra.mxu0 %vm317_vm1, %v847_v29 }
 0x1ef   :  { %1946 = vmatpush.xpose.msk.msra.mxu0 %vm317_vm1, %v1191_v28 }
 0x1f0   :  { %1496 = vrot.lane.b32.xlu1 %v2541_v32, %s2397_s23 }
 0x1f3   :  { %1947 = vmatpush.xpose.msk.msra.mxu0 %vm317_vm1, %v1189_v30  ;;  %v1495_v30 = vpop.permute.xlu2 %1494 }
 0x1f5   :  { %v2705_v33 = vpop.permute.xlu0 %1158 }
 0x1f8   :  { %1530 = vrot.lane.b32.xlu1 %v2543_v34, %s2397_s23  ;;  %v2085_v34 = vld [vmem:[%s3147_s7] ss:$0 sm:$0xff] }
 0x1f9   :  { %v306_v48 = vadd.f32 %v2085_v34, %v305_v41  ;;  %v309_v49 = vadd.f32 %v2085_v34, %v308_v43  ;;  %v315_v56 = vadd.f32 %v2085_v34, %v314_v52  ;;  %v312_v57 = vadd.f32 %v2085_v34, %v311_v50 }
 0x1fb   :  { %441 = vmatpush.msra.mxu3 %v309_v49  ;;  %v2723_v59 = vpack.i.bf16 %v306_v48, %v309_v49  ;;  %v2725_v61 = vpack.i.bf16 %v312_v57, %v315_v56 }
 0x1fd   :  { %v1017_v36 = vpop.permute.xlu0 %1016  ;;  %442 = vmatpush.msra.mxu3 %v306_v48 }
 0x1fe   :  { %1940 = vmatmul.msk.f32.vlgmr.msrb.gmra.mxu0 %vm317_vm1, %v1017_v36 }
 0x1ff   :  { %1954 = vmatpush.xpose.msk.msrb.mxu0 %vm317_vm1, %v1361_v37  ;;  %464 = vmatpush.msrb.mxu3 %v315_v56 }
 0x201   :  { %465 = vmatpush.msrb.mxu3 %v312_v57 }
 0x203   :  { %1955 = vmatpush.xpose.msk.msrb.mxu0 %vm317_vm1, %v1359_v38 }
 0x205   :  { %v2714_v32 = vpop.permute.xlu0 %1328 }
 0x20d   :  { %v1187_v39 = vpop.permute.xlu0 %1186 }
 0x20e   :  { %1948 = vmatmul.msk.f32.vlgmr.msra.gmra.mxu0 %vm317_vm1, %v1187_v39 }
 0x215   :  { %v2717_v40 = vpop.permute.xlu0 %1498 }
 0x21d   :  { %v1357_v42 = vpop.permute.xlu0 %1356 }
 0x21e   :  { %1956 = vmatmul.msk.f32.vlgmr.msrb.gmra.mxu0 %vm317_vm1, %v1357_v42 }
 0x225   :  { %v1529_v36 = vpop.permute.xlu0 %1528 }
 0x242   :  { %v390_v60 = vpop.xlane.xlu1 %389 }
 0x243   :  { %2093 = vrcp.f32 %v390_v60  ;;  %v405_v2 = vand.u32 2147483648, %v390_v60  ;;  %v403_v4 = vand.u32 2147483647, %v390_v60  ;;  %vm399_vm3 = vweird.f32 %v390_v60 }
 0x245   :  { %v406_v7 = vor.u32 1.1754944e-38, %v405_v2  ;;  %vm404_vm5 = vcmp.eq.f32.partialorder %v403_v4, 8.507059e+37 }
 0x249   :  { %v2094_v62 = vpop.eup %2093 }
 0x24a   :  { %v395_v63 = vmul.f32 %v2094_v62, %v390_v60  ;;  %v393_v0 = vpop.xlane.xlu1 %392  ;;  %vm400_vm2 = vweird.f32 %v2094_v62 }
 0x24b   :  { %2095 = vrcp.f32 %v393_v0  ;;  %vm401_vm4 = vmor %vm399_vm3, %vm400_vm2  ;;  %v420_v15 = vand.u32 2147483648, %v393_v0  ;;  %v418_v19 = vand.u32 2147483647, %v393_v0  ;;  %vm414_vm7 = vweird.f32 %v393_v0 }
 0x24c   :  { %v396_v1 = vsub.f32 1.0, %v395_v63 }
 0x24d   :  { %v421_v22 = vor.u32 1.1754944e-38, %v420_v15  ;;  %vm419_vm9 = vcmp.eq.f32.partialorder %v418_v19, 8.507059e+37 }
 0x24e   :  { %v397_v3 = vmul.f32 %v2094_v62, %v396_v1 }
 0x250   :  { %v398_v5 = vadd.f32 %v2094_v62, %v397_v3 }
 0x251   :  { %v2096_v6 = vpop.eup %2095 }
 0x252   :  { %v402_v8 = vsel %vm401_vm4, %v2094_v62, %v398_v5  ;;  %v410_v9 = vmul.f32 %v2096_v6, %v393_v0  ;;  %vm415_vm6 = vweird.f32 %v2096_v6 }
 0x253   :  { %v407_v10 = vsel %vm404_vm5, %v406_v7, %v402_v8  ;;  %vm416_vm8 = vmor %vm414_vm7, %vm415_vm6 }
 0x254   :  { %v411_v11 = vsub.f32 1.0, %v410_v9  ;;  %v408_v12 = vmul.f32 %v2675_v14, %v407_v10 }
 0x256   :  { %v412_v16 = vmul.f32 %v2096_v6, %v411_v11  ;;  %1909 = vmatmul.msk.f32.vlgmr.msra.gmra.mxu3 %vm317_vm1, %v408_v12 }
 0x257   :  { %1911 = vmatpush.xpose.msk.msra.mxu3 %vm317_vm1, %v2617_v46 }
 0x258   :  { %v413_v20 = vadd.f32 %v2096_v6, %v412_v16 }
 0x25a   :  { %v417_v23 = vsel %vm416_vm8, %v2096_v6, %v413_v20 }
 0x25b   :  { %v422_v24 = vsel %vm419_vm9, %v421_v22, %v417_v23  ;;  %1912 = vmatpush.xpose.msk.msra.mxu3 %vm317_vm1, %v2610_v44  ;;  %v705_v14 = vpop.f32.mrf.mxu0 }
 0x25c   :  { %v711_v28 = vsel %vm317_vm1, %v705_v14, -inf  ;;  %v423_v29 = vmul.f32 %v2681_v18, %v422_v24 }
 0x25d   :  { %712 = vmax.xlane.f32.xlu1 %v711_v28 }
 0x25e   :  { %1910 = vmatmul.msk.f32.vlgmr.msrb.gmra.mxu3 %vm317_vm1, %v423_v29 }
 0x25f   :  { %1919 = vmatpush.xpose.msk.msrb.mxu3 %vm317_vm1, %v2621_v47 }
 0x262   :  { %v1497_v46 = vpop.permute.xlu1 %1496 }
 0x263   :  { %1920 = vmatpush.xpose.msk.msrb.mxu3 %vm317_vm1, %v2614_v45  ;;  %v1527_v45 = vpop.permute.xlu2 %1526 }
 0x266   :  { %1913 = vmatmul.msk.f32.vlgmr.msra.gmra.mxu3 %vm317_vm1, %v2634_v54  ;;  %v539_v54 = vpop.xlane.xlu0 %538 }
 0x267   :  { %1927 = vmatpush.xpose.msk.msra.mxu3 %vm317_vm1, %v2627_v51 }
 0x26a   :  { %v1531_v44 = vpop.permute.xlu1 %1530 }
 0x26b   :  { %1928 = vmatpush.xpose.msk.msra.mxu3 %vm317_vm1, %v2631_v53  ;;  %v875_v18 = vpop.f32.mrf.mxu0  ;;  %1962 = vmatpush.xpose.msk.msra.mxu0 %vm317_vm1, %v1531_v44 }
 0x26c   :  { %v881_v47 = vsel %vm317_vm1, %v875_v18, -inf }
 0x26d   :  { %882 = vmax.xlane.f32.xlu2 %v881_v47 }
 0x26e   :  { %1921 = vmatmul.msk.f32.vlgmr.msrb.gmra.mxu3 %vm317_vm1, %v2636_v55  ;;  %v541_v55 = vsub.f32 %v2685_v21, %v539_v54 }
 0x26f   :  { %1935 = vmatpush.xpose.msk.msrb.mxu3 %vm317_vm1, %v2696_v27  ;;  %1963 = vmatpush.xpose.msk.msra.mxu0 %vm317_vm1, %v1529_v36 }
 0x272   :  { %1964 = vmatmul.msk.f32.vlgmr.msra.gmra.mxu0 %vm317_vm1, %v1527_v45 }
 0x273   :  { %1936 = vmatpush.xpose.msk.msrb.mxu3 %vm317_vm1, %v2673_v13 }
 0x276   :  { %1929 = vmatmul.msk.f32.vlgmr.msra.gmra.mxu3 %vm317_vm1, %v2640_v58  ;;  %1999 = vrot.lane.b32.xlu1 %v2725_v61, %s2391_s16  ;;  %v544_v58 = vmul.f32 1.442695, %v541_v55 }
 0x277   :  { %1943 = vmatpush.xpose.msk.msra.mxu3 %vm317_vm1, %v2705_v33 }
 0x278   :  { %2097 = vpow2.f32 %v544_v58 }
 0x27b   :  { %1944 = vmatpush.xpose.msk.msra.mxu3 %vm317_vm1, %v2691_v25  ;;  %v1045_v51 = vpop.f32.mrf.mxu0 }
 0x27c   :  { %v1051_v53 = vsel %vm317_vm1, %v1045_v51, -inf }
 0x27d   :  { %1052 = vmax.xlane.f32.xlu0 %v1051_v53 }
 0x27e   :  { %2009 = vrot.lane.b32.xlu1 %v2725_v61, %s2392_s5  ;;  %1937 = vmatmul.msk.f32.vlgmr.msrb.gmra.mxu3 %vm317_vm1, %v2679_v17  ;;  %v2794_v25 = vpop.eup %2097 }
 0x27f   :  { %1951 = vmatpush.xpose.msk.msrb.mxu3 %vm317_vm1, %v2714_v32 }
 0x283   :  { %1952 = vmatpush.xpose.msk.msrb.mxu3 %vm317_vm1, %v2703_v31 }
 0x285   :  { %2004 = vrot.lane.b32.xlu2 %v2723_v59, %s2392_s5 }
 0x286   :  { %1945 = vmatmul.msk.f32.vlgmr.msra.gmra.mxu3 %vm317_vm1, %v2694_v26  ;;  %v549_v26 = vsel %vm317_vm1, %v2794_v25, 0.0 }
 0x287   :  { %1959 = vmatpush.xpose.msk.msra.mxu3 %vm317_vm1, %v2717_v40 }
 0x28b   :  { %1960 = vmatpush.xpose.msk.msra.mxu3 %vm317_vm1, %v1497_v46  ;;  %v2790_v13 = vpop.f32.mrf.mxu0 }
 0x28c   :  { %v1221_v17 = vsel %vm317_vm1, %v2790_v13, -inf }
 0x28d   :  { %2014 = vrot.lane.b32.xlu2 %v2723_v59, %s2393_s17 }
 0x28e   :  { %1953 = vmatmul.msk.f32.vlgmr.msrb.gmra.mxu3 %vm317_vm1, %v2707_v35 }
 0x291   :  { %1994 = vrot.lane.b32.xlu0 %v2723_v59, %s2391_s16 }
 0x296   :  { %1961 = vmatmul.msk.f32.vlgmr.msra.gmra.mxu3 %vm317_vm1, %v1495_v30 }
 0x299   :  { %2019 = vrot.lane.b32.xlu0 %v2725_v61, %s2393_s17 }
 0x29b   :  { %v2798_v27 = vpop.f32.mrf.mxu0 }
 0x29c   :  { %v1391_v31 = vsel %vm317_vm1, %v2798_v27, -inf }
 0x2a8   :  { %1222 = vmax.xlane.f32.xlu1 %v1221_v17 }
 0x2b0   :  { %550 = vadd.xlane.f32.xlu1 %v549_v26 }
 0x2b6   :  { %1392 = vmax.xlane.f32.xlu2 %v1391_v31 }
 0x2d0   :  { %v713_v21 = vpop.xlane.xlu1 %712 }
 0x2d1   :  { %v715_v33 = vsub.f32 %v705_v14, %v713_v21 }
 0x2d3   :  { %v718_v35 = vmul.f32 1.442695, %v715_v33 }
 0x2d5   :  { %2099 = vpow2.f32 %v718_v35 }
 0x2d9   :  { %v2802_v37 = vpop.f32.mrf.mxu3 }
 0x2db   :  { %v2804_v38 = vpop.eup %2099 }
 0x2dc   :  { %v723_v32 = vsel %vm317_vm1, %v2804_v38, 0.0 }
 0x2dd   :  { %724 = vadd.xlane.f32.xlu2 %v723_v32 }
 0x2e0   :  { %v883_v39 = vpop.xlane.xlu2 %882 }
 0x2e1   :  { %v885_v40 = vsub.f32 %v875_v18, %v883_v39  ;;  %v2808_v41 = vpop.f32.mrf.mxu3 }
 0x2e3   :  { %v888_v42 = vmul.f32 1.442695, %v885_v40 }
 0x2e5   :  { %2101 = vpow2.f32 %v888_v42 }
 0x2e8   :  { %v2000_v34 = vpop.permute.xlu1 %1999  ;;  %v2005_v9 = vpop.permute.xlu2 %2004 }
 0x2e9   :  { %v2001_v43 = vunpack.i.l.bf16 %v2000_v34  ;;  %v2810_v48 = vpop.f32.mrf.mxu3  ;;  %v2002_v52 = vunpack.i.h.bf16 %v2000_v34  ;;  %v2006_v15 = vunpack.i.l.bf16 %v2005_v9  ;;  %v2007_v16 = vunpack.i.h.bf16 %v2005_v9 }
 0x2ea   :  { %v534_v49 = vsel %vm317_vm1, %v2810_v48, -inf }
 0x2eb   :  { %v2814_v50 = vpop.eup %2101  ;;  %638 = vmatpush.msra.mxu2 %v2001_v43  ;;  %535 = vmax.xlane.f32.xlu1 %v534_v49 }
 0x2ec   :  { %v893_v56 = vsel %vm317_vm1, %v2814_v50, 0.0 }
 0x2ed   :  { %639 = vmatpush.msra.mxu2 %v2002_v52  ;;  %894 = vadd.xlane.f32.xlu2 %v893_v56 }
 0x2ef   :  { %v2818_v57 = vpop.f32.mrf.mxu0 }
 0x2f0   :  { %v2010_v60 = vpop.permute.xlu1 %2009  ;;  %v1561_v62 = vsel %vm317_vm1, %v2818_v57, -inf  ;;  %v1053_v0 = vpop.xlane.xlu0 %1052 }
 0x2f1   :  { %v2011_v63 = vunpack.i.l.bf16 %v2010_v60  ;;  %1562 = vmax.xlane.f32.xlu0 %v1561_v62  ;;  %v1055_v1 = vsub.f32 %v1045_v51, %v1053_v0  ;;  %v2012_v2 = vunpack.i.h.bf16 %v2010_v60  ;;  %v2822_v4 = vpop.f32.mrf.mxu3  ;;  %v2835_v23 = vpop.permute.xlu2 %2014 }
 0x2f2   :  { %v708_v55 = vsel %vm317_vm1, %v2822_v4, -inf }
 0x2f3   :  { %808 = vmatpush.msrb.mxu2 %v2011_v63  ;;  %v1058_v3 = vmul.f32 1.442695, %v1055_v1 }
 0x2f5   :  { %809 = vmatpush.msrb.mxu2 %v2012_v2  ;;  %2103 = vpow2.f32 %v1058_v3 }
 0x2f9   :  { %v2828_v7 = vpop.f32.mrf.mxu3 }
 0x2fa   :  { %v878_v11 = vsel %vm317_vm1, %v2828_v7, -inf }
 0x2fb   :  { %v2824_v5 = vpop.eup %2103 }
 0x2fc   :  { %v1063_v6 = vsel %vm317_vm1, %v2824_v5, 0.0 }
 0x2fd   :  { %1064 = vadd.xlane.f32.xlu0 %v1063_v6 }
 0x301   :  { %v2837_v14 = vpop.f32.mrf.mxu3 }
 0x302   :  { %v1048_v42 = vsel %vm317_vm1, %v2837_v14, -inf }
 0x303   :  { %v1995_v8 = vpop.permute.xlu0 %1994 }
 0x304   :  { %v1996_v10 = vunpack.i.l.bf16 %v1995_v8  ;;  %v1997_v12 = vunpack.i.h.bf16 %v1995_v8 }
 0x305   :  { %879 = vmax.xlane.f32.xlu0 %v878_v11 }
 0x306   :  { %607 = vmatpush.msra.mxu1 %v1996_v10 }
 0x308   :  { %608 = vmatpush.msra.mxu1 %v1997_v12 }
 0x309   :  { %v2844_v45 = vpop.f32.mrf.mxu3 }
 0x30a   :  { %779 = vmatpush.msrb.mxu1 %v2006_v15  ;;  %v1218_v32 = vsel %vm317_vm1, %v2844_v45, -inf }
 0x30b   :  { %v2020_v17 = vpop.permute.xlu0 %2019 }
 0x30c   :  { %780 = vmatpush.msrb.mxu1 %v2007_v16  ;;  %v2021_v35 = vunpack.i.l.bf16 %v2020_v17  ;;  %v2022_v39 = vunpack.i.h.bf16 %v2020_v17 }
 0x311   :  { %v2856_v40 = vpop.f32.mrf.mxu3 }
 0x319   :  { %2024 = vrot.lane.b32.xlu0 %v2723_v59, %s2394_s3  ;;  %v2860_v34 = vpop.f32.mrf.mxu3 }
 0x31a   :  { %v1558_v43 = vsel %vm317_vm1, %v2860_v34, -inf }
 0x31b   :  { %v1223_v19 = vpop.xlane.xlu1 %1222 }
 0x31c   :  { %v1225_v20 = vsub.f32 %v2790_v13, %v1223_v19 }
 0x31e   :  { %v1228_v22 = vmul.f32 1.442695, %v1225_v20 }
 0x320   :  { %2105 = vpow2.f32 %v1228_v22 }
 0x323   :  { %v551_v24 = vpop.xlane.xlu1 %550 }
 0x324   :  { %2107 = vrcp.f32 %v551_v24  ;;  %v578_v51 = vand.u32 2147483648, %v551_v24  ;;  %v576_v54 = vand.u32 2147483647, %v551_v24  ;;  %vm572_vm11 = vweird.f32 %v551_v24 }
 0x326   :  { %v2839_v28 = vpop.eup %2105  ;;  %v579_v13 = vor.u32 1.1754944e-38, %v578_v51  ;;  %vm577_vm13 = vcmp.eq.f32.partialorder %v576_v54, 8.507059e+37 }
 0x327   :  { %v1233_v29 = vsel %vm317_vm1, %v2839_v28, 0.0 }
 0x328   :  { %1234 = vadd.xlane.f32.xlu2 %v1233_v29 }
 0x329   :  { %v1393_v46 = vpop.xlane.xlu2 %1392 }
 0x32a   :  { %v2108_v30 = vpop.eup %2107  ;;  %v1395_v44 = vsub.f32 %v2798_v27, %v1393_v46 }
 0x32b   :  { %v568_v18 = vmul.f32 %v2108_v30, %v551_v24  ;;  %vm573_vm10 = vweird.f32 %v2108_v30 }
 0x32c   :  { %v1398_v47 = vmul.f32 1.442695, %v1395_v44  ;;  %vm574_vm12 = vmor %vm572_vm11, %vm573_vm10 }
 0x32d   :  { %v569_v36 = vsub.f32 1.0, %v568_v18 }
 0x32e   :  { %2109 = vpow2.f32 %v1398_v47 }
 0x32f   :  { %v570_v53 = vmul.f32 %v2108_v30, %v569_v36 }
 0x330   :  { %709 = vmax.xlane.f32.xlu2 %v708_v55 }
 0x331   :  { %v571_v58 = vadd.f32 %v2108_v30, %v570_v53 }
 0x333   :  { %v575_v26 = vsel %vm574_vm12, %v2108_v30, %v571_v58 }
 0x334   :  { %v2848_v27 = vpop.eup %2109  ;;  %v580_v31 = vsel %vm577_vm13, %v579_v13, %v575_v26 }
 0x335   :  { %v1403_v21 = vsel %vm317_vm1, %v2848_v27, 0.0  ;;  %v581_v33 = vmul.f32 %v2794_v25, %v580_v31  ;;  %v1388_v25 = vsel %vm317_vm1, %v2856_v40, -inf }
 0x336   :  { %1404 = vadd.xlane.f32.xlu1 %v1403_v21 }
 0x337   :  { %1918 = vmatmul.msk.f32.vlgmr.msra.gmra.mxu2 %vm317_vm1, %v581_v33 }
 0x338   :  { %978 = vmatpush.msra.mxu2 %v2021_v35  ;;  %1219 = vmax.xlane.f32.xlu2 %v1218_v32 }
 0x33a   :  { %979 = vmatpush.msra.mxu2 %v2022_v39 }
 0x33e   :  { %1049 = vmax.xlane.f32.xlu1 %v1048_v42 }
 0x343   :  { %1389 = vmax.xlane.f32.xlu0 %v1388_v25 }
 0x346   :  { %1559 = vmax.xlane.f32.xlu1 %v1558_v43 }
 0x350   :  { %v725_v49 = vpop.xlane.xlu2 %724 }
 0x351   :  { %2111 = vrcp.f32 %v725_v49  ;;  %v752_v62 = vand.u32 2147483648, %v725_v49  ;;  %v750_v0 = vand.u32 2147483647, %v725_v49  ;;  %vm746_vm15 = vweird.f32 %v725_v49 }
 0x353   :  { %v753_v3 = vor.u32 1.1754944e-38, %v752_v62  ;;  %vm751_vm3 = vcmp.eq.f32.partialorder %v750_v0, 8.507059e+37 }
 0x357   :  { %v2112_v52 = vpop.eup %2111 }
 0x358   :  { %v742_v56 = vmul.f32 %v2112_v52, %v725_v49  ;;  %vm747_vm14 = vweird.f32 %v2112_v52 }
 0x359   :  { %vm748_vm2 = vmor %vm746_vm15, %vm747_vm14 }
 0x35a   :  { %v743_v60 = vsub.f32 1.0, %v742_v56 }
 0x35c   :  { %v744_v63 = vmul.f32 %v2112_v52, %v743_v60 }
 0x35e   :  { %v745_v1 = vadd.f32 %v2112_v52, %v744_v63  ;;  %v536_v2 = vpop.xlane.xlu1 %535 }
 0x35f   :  { %v540_v6 = vsub.f32 %v2810_v48, %v536_v2  ;;  %2034 = vrot.lane.b32.xlu1 %v2723_v59, %s2395_s19 }
 0x360   :  { %v749_v8 = vsel %vm748_vm2, %v2112_v52, %v745_v1  ;;  %v895_v9 = vpop.xlane.xlu2 %894 }
 0x361   :  { %v754_v10 = vsel %vm751_vm3, %v753_v3, %v749_v8  ;;  %v542_v11 = vmul.f32 1.442695, %v540_v6  ;;  %2113 = vrcp.f32 %v895_v9  ;;  %v922_v24 = vand.u32 2147483648, %v895_v9 }
 0x362   :  { %v755_v12 = vmul.f32 %v2804_v38, %v754_v10  ;;  %v920_v38 = vand.u32 2147483647, %v895_v9  ;;  %vm916_vm5 = vweird.f32 %v895_v9 }
 0x363   :  { %2115 = vpow2.f32 %v542_v11  ;;  %v923_v30 = vor.u32 1.1754944e-38, %v922_v24 }
 0x364   :  { %1926 = vmatmul.msk.f32.vlgmr.msrb.gmra.mxu2 %vm317_vm1, %v755_v12  ;;  %v2875_v20 = vpop.xlane.xlu0 %1562  ;;  %vm921_vm7 = vcmp.eq.f32.partialorder %v920_v38, 8.507059e+37  ;;  %v2017_v38 = vunpack.i.h.bf16 %v2835_v23 }
 0x365   :  { %v1565_v3 = vsub.f32 %v2818_v57, %v2875_v20 }
 0x367   :  { %v2114_v15 = vpop.eup %2113  ;;  %2044 = vrot.lane.b32.xlu1 %v2723_v59, %s2396_s20  ;;  %v1568_v8 = vmul.f32 1.442695, %v1565_v3 }
 0x368   :  { %v912_v16 = vmul.f32 %v2114_v15, %v895_v9  ;;  %vm917_vm4 = vweird.f32 %v2114_v15 }
 0x369   :  { %v2873_v48 = vpop.eup %2115  ;;  %vm918_vm6 = vmor %vm916_vm5, %vm917_vm4 }
 0x36a   :  { %v913_v19 = vsub.f32 1.0, %v912_v16  ;;  %v546_v22 = vsel %vm317_vm1, %v2873_v48, 0.0 }
 0x36b   :  { %547 = vadd.xlane.f32.xlu2 %v546_v22 }
 0x36c   :  { %v914_v29 = vmul.f32 %v2114_v15, %v913_v19 }
 0x36e   :  { %v915_v46 = vadd.f32 %v2114_v15, %v914_v29  ;;  %v2016_v29 = vunpack.i.l.bf16 %v2835_v23 }
 0x370   :  { %v919_v44 = vsel %vm918_vm6, %v2114_v15, %v915_v46  ;;  %v2879_v47 = vpop.xlane.xlu0 %1064 }
 0x371   :  { %v924_v18 = vsel %vm921_vm7, %v923_v30, %v919_v44  ;;  %vm1086_vm13 = vweird.f32 %v2879_v47 }
 0x372   :  { %v925_v36 = vmul.f32 %v2814_v50, %v924_v18 }
 0x374   :  { %1934 = vmatmul.msk.f32.vlgmr.msra.gmra.mxu2 %vm317_vm1, %v925_v36 }
 0x378   :  { %v880_v51 = vpop.xlane.xlu0 %879 }
 0x379   :  { %v884_v53 = vsub.f32 %v2828_v7, %v880_v51 }
 0x37b   :  { %v886_v54 = vmul.f32 1.442695, %v884_v53 }
 0x37d   :  { %2117 = vpow2.f32 %v886_v54 }
 0x383   :  { %2039 = vrot.lane.b32.xlu2 %v2725_v61, %s2395_s19  ;;  %v2888_v55 = vpop.eup %2117 }
 0x384   :  { %v890_v58 = vsel %vm317_vm1, %v2888_v55, 0.0 }
 0x38b   :  { %2049 = vrot.lane.b32.xlu2 %v2725_v61, %s2396_s20  ;;  %v2900_v32 = vpop.permute.xlu0 %2024 }
 0x391   :  { %891 = vadd.xlane.f32.xlu1 %v890_v58 }
 0x39b   :  { %v2892_v50 = vpop.xlane.xlu2 %1234 }
 0x3a3   :  { %v710_v13 = vpop.xlane.xlu2 %709 }
 0x3a4   :  { %v714_v17 = vsub.f32 %v2822_v4, %v710_v13 }
 0x3a6   :  { %v716_v7 = vmul.f32 1.442695, %v714_v17 }
 0x3a8   :  { %2119 = vpow2.f32 %v716_v7 }
 0x3a9   :  { %v2895_v26 = vpop.xlane.xlu1 %1404 }
 0x3ab   :  { %v1220_v31 = vpop.xlane.xlu2 %1219 }
 0x3ac   :  { %v1224_v21 = vsub.f32 %v2844_v45, %v1220_v31 }
 0x3ae   :  { %v2898_v33 = vpop.eup %2119  ;;  %v1226_v35 = vmul.f32 1.442695, %v1224_v21 }
 0x3af   :  { %v720_v39 = vsel %vm317_vm1, %v2898_v33, 0.0 }
 0x3b0   :  { %2121 = vpow2.f32 %v1226_v35  ;;  %721 = vadd.xlane.f32.xlu0 %v720_v39 }
 0x3b1   :  { %v1050_v42 = vpop.xlane.xlu1 %1049 }
 0x3b2   :  { %v1054_v4 = vsub.f32 %v2837_v14, %v1050_v42  ;;  %v1090_v42 = vand.u32 2147483647, %v2879_v47 }
 0x3b4   :  { %v1056_v25 = vmul.f32 1.442695, %v1054_v4  ;;  %vm2975_vm2 = vcmp.eq.f32.partialorder %v1090_v42, 8.507059e+37 }
 0x3b6   :  { %v2905_v43 = vpop.eup %2121  ;;  %2123 = vpow2.f32 %v1056_v25  ;;  %v1390_v49 = vpop.xlane.xlu0 %1389 }
 0x3b7   :  { %v1230_v45 = vsel %vm317_vm1, %v2905_v43, 0.0  ;;  %v1394_v52 = vsub.f32 %v2856_v40, %v1390_v49 }
 0x3b8   :  { %1231 = vadd.xlane.f32.xlu1 %v1230_v45  ;;  %v1092_v45 = vand.u32 2147483648, %v2879_v47 }
 0x3b9   :  { %v1560_v56 = vpop.xlane.xlu1 %1559  ;;  %v1396_v60 = vmul.f32 1.442695, %v1394_v52 }
 0x3ba   :  { %v1564_v62 = vsub.f32 %v2860_v34, %v1560_v56 }
 0x3bb   :  { %2125 = vpow2.f32 %v1396_v60 }
 0x3bc   :  { %v2911_v63 = vpop.eup %2123  ;;  %v1566_v0 = vmul.f32 1.442695, %v1564_v62 }
 0x3bd   :  { %v1060_v14 = vsel %vm317_vm1, %v2911_v63, 0.0 }
 0x3be   :  { %2127 = vpow2.f32 %v1566_v0  ;;  %1061 = vadd.xlane.f32.xlu2 %v1060_v14 }
 0x3c1   :  { %v2915_v1 = vpop.eup %2125 }
 0x3c2   :  { %v1400_v2 = vsel %vm317_vm1, %v2915_v1, 0.0 }
 0x3c3   :  { %1401 = vadd.xlane.f32.xlu1 %v1400_v2 }
 0x3c4   :  { %v2919_v40 = vpop.eup %2127  ;;  %2029 = vrot.lane.b32.xlu0 %v2725_v61, %s2394_s3 }
 0x3c5   :  { %v1570_v34 = vsel %vm317_vm1, %v2919_v40, 0.0 }
 0x3c6   :  { %1571 = vadd.xlane.f32.xlu2 %v1570_v34 }
 0x3d1   :  { %v2939_v46 = vpop.permute.xlu1 %2034 }
 0x3d9   :  { %v2941_v30 = vpop.permute.xlu1 %2044 }
 0x3dc   :  { %2054 = vrot.lane.b32.xlu1 %v2723_v59, %s2397_s23 }
 0x3de   :  { %v548_v6 = vpop.xlane.xlu2 %547  ;;  %2059 = vrot.lane.b32.xlu2 %v2725_v61, %s2397_s23 }
 0x3df   :  { %2129 = vrcp.f32 %v548_v6  ;;  %v563_v12 = vand.u32 2147483648, %v548_v6  ;;  %v561_v19 = vand.u32 2147483647, %v548_v6  ;;  %vm557_vm9 = vweird.f32 %v548_v6 }
 0x3e0   :  { %2131 = vpow2.f32 %v1568_v8  ;;  %v1093_v8 = vor.u32 1.1754944e-38, %v1092_v45  ;;  %v1430_v45 = vand.u32 2147483647, %v2895_v26 }
 0x3e1   :  { %v564_v59 = vor.u32 1.1754944e-38, %v563_v12  ;;  %vm562_vm11 = vcmp.eq.f32.partialorder %v561_v19, 8.507059e+37  ;;  %2133 = vrcp.f32 %v2879_v47 }
 0x3e5   :  { %v2130_v9 = vpop.eup %2129 }
 0x3e6   :  { %v553_v10 = vmul.f32 %v2130_v9, %v548_v6  ;;  %v2931_v15 = vpop.eup %2131  ;;  %vm558_vm8 = vweird.f32 %v2130_v9 }
 0x3e7   :  { %vm559_vm10 = vmor %vm557_vm9, %vm558_vm8  ;;  %v1573_v20 = vsel %vm317_vm1, %v2931_v15, 0.0  ;;  %v2134_v18 = vpop.eup %2133 }
 0x3e8   :  { %v554_v11 = vsub.f32 1.0, %v553_v10  ;;  %v1082_v36 = vmul.f32 %v2134_v18, %v2879_v47  ;;  %vm1087_vm12 = vweird.f32 %v2134_v18 }
 0x3e9   :  { %vm2971_vm15 = vmor %vm1086_vm13, %vm1087_vm12 }
 0x3ea   :  { %v555_v16 = vmul.f32 %v2130_v9, %v554_v11  ;;  %v1083_v53 = vsub.f32 1.0, %v1082_v36 }
 0x3ec   :  { %v556_v57 = vadd.f32 %v2130_v9, %v555_v16  ;;  %v1084_v13 = vmul.f32 %v2134_v18, %v1083_v53 }
 0x3ee   :  { %v560_v61 = vsel %vm559_vm10, %v2130_v9, %v556_v57  ;;  %1574 = vadd.xlane.f32.xlu0 %v1573_v20  ;;  %v1085_v4 = vadd.f32 %v2134_v18, %v1084_v13  ;;  %vm1256_vm10 = vweird.f32 %v2892_v50 }
 0x3ef   :  { %v565_v22 = vsel %vm562_vm11, %v564_v59, %v560_v61 }
 0x3f0   :  { %v566_v24 = vmul.f32 %v2873_v48, %v565_v22  ;;  %v2947_v48 = vpop.permute.xlu2 %2039  ;;  %v1089_v47 = vsel %vm2971_vm15, %v2134_v18, %v1085_v4 }
 0x3f1   :  { %v1094_v19 = vsel %vm2975_vm2, %v1093_v8, %v1089_v47  ;;  %v2036_v8 = vunpack.i.l.bf16 %v2939_v46 }
 0x3f2   :  { %1917 = vmatmul.msk.f32.vlgmr.msra.gmra.mxu1 %vm317_vm1, %v566_v24  ;;  %v2026_v24 = vunpack.i.l.bf16 %v2900_v32 }
 0x3f3   :  { %949 = vmatpush.msra.mxu1 %v2016_v29  ;;  %v1260_v29 = vand.u32 2147483647, %v2892_v50 }
 0x3f5   :  { %950 = vmatpush.msra.mxu1 %v2017_v38  ;;  %v1262_v38 = vand.u32 2147483648, %v2892_v50  ;;  %vm1261_vm13 = vcmp.eq.f32.partialorder %v1260_v29, 8.507059e+37 }
 0x3f7   :  { %v1263_v4 = vor.u32 1.1754944e-38, %v1262_v38 }
 0x3f8   :  { %v2960_v7 = vpop.permute.xlu2 %2049 }
 0x404   :  { %v2944_v44 = vpop.xlane.xlu1 %891 }
 0x405   :  { %2135 = vrcp.f32 %v2944_v44  ;;  %v907_v57 = vand.u32 2147483648, %v2944_v44  ;;  %vm901_vm8 = vweird.f32 %v2944_v44  ;;  %v905_v61 = vand.u32 2147483647, %v2944_v44 }
 0x406   :  { %2137 = vrcp.f32 %v2892_v50 }
 0x407   :  { %vm906_vm12 = vcmp.eq.f32.partialorder %v905_v61, 8.507059e+37 }
 0x40b   :  { %v2951_v51 = vpop.eup %2135 }
 0x40c   :  { %v2953_v54 = vpop.eup %2137  ;;  %v897_v58 = vmul.f32 %v2951_v51, %v2944_v44  ;;  %vm902_vm5 = vweird.f32 %v2951_v51 }
 0x40d   :  { %v1252_v17 = vmul.f32 %v2953_v54, %v2892_v50  ;;  %vm1257_vm7 = vweird.f32 %v2953_v54  ;;  %vm3004_vm9 = vmor %vm901_vm8, %vm902_vm5  ;;  %v908_v50 = vor.u32 1.1754944e-38, %v907_v57  ;;  %vm1431_vm8 = vcmp.eq.f32.partialorder %v1430_v45, 8.507059e+37 }
 0x40e   :  { %v898_v21 = vsub.f32 1.0, %v897_v58  ;;  %vm3020_vm11 = vmor %vm1256_vm10, %vm1257_vm7 }
 0x40f   :  { %v1253_v25 = vsub.f32 1.0, %v1252_v17  ;;  %v2027_v17 = vunpack.i.h.bf16 %v2900_v32 }
 0x410   :  { %v899_v60 = vmul.f32 %v2951_v51, %v898_v21 }
 0x411   :  { %v1254_v34 = vmul.f32 %v2953_v54, %v1253_v25 }
 0x412   :  { %v900_v11 = vadd.f32 %v2951_v51, %v899_v60 }
 0x413   :  { %v1255_v20 = vadd.f32 %v2953_v54, %v1254_v34 }
 0x415   :  { %v1259_v21 = vsel %vm3020_vm11, %v2953_v54, %v1255_v20 }
 0x416   :  { %v1264_v54 = vsel %vm1261_vm13, %v1263_v4, %v1259_v21 }
 0x423   :  { %v722_v23 = vpop.xlane.xlu0 %721 }
 0x424   :  { %2139 = vrcp.f32 %v722_v23  ;;  %v737_v52 = vand.u32 2147483648, %v722_v23  ;;  %v735_v0 = vand.u32 2147483647, %v722_v23  ;;  %vm731_vm3 = vweird.f32 %v722_v23 }
 0x425   :  { %2141 = vrcp.f32 %v2895_v26 }
 0x426   :  { %v738_v10 = vor.u32 1.1754944e-38, %v737_v52  ;;  %vm736_vm6 = vcmp.eq.f32.partialorder %v735_v0, 8.507059e+37 }
 0x42a   :  { %v2140_v31 = vpop.eup %2139 }
 0x42b   :  { %v727_v35 = vmul.f32 %v2140_v31, %v722_v23  ;;  %v2962_v39 = vpop.xlane.xlu1 %1231  ;;  %v2968_v56 = vpop.eup %2141  ;;  %vm732_vm14 = vweird.f32 %v2140_v31 }
 0x42c   :  { %2143 = vrcp.f32 %v2962_v39  ;;  %v1422_v9 = vmul.f32 %v2968_v56, %v2895_v26  ;;  %vm733_vm4 = vmor %vm731_vm3, %vm732_vm14  ;;  %vm1427_vm14 = vweird.f32 %v2968_v56 }
 0x42d   :  { %v728_v49 = vsub.f32 1.0, %v727_v35 }
 0x42e   :  { %v1423_v18 = vsub.f32 1.0, %v1422_v9  ;;  %v2051_v9 = vunpack.i.l.bf16 %v2960_v7 }
 0x42f   :  { %v729_v62 = vmul.f32 %v2140_v31, %v728_v49 }
 0x430   :  { %v1424_v25 = vmul.f32 %v2968_v56, %v1423_v18  ;;  %v1247_v18 = vand.u32 2147483648, %v2962_v39 }
 0x431   :  { %v730_v3 = vadd.f32 %v2140_v31, %v729_v62  ;;  %v2982_v6 = vpop.xlane.xlu2 %1061  ;;  %v2042_v62 = vunpack.i.h.bf16 %v2947_v48 }
 0x432   :  { %2145 = vrcp.f32 %v2982_v6  ;;  %v2989_v16 = vpop.eup %2143  ;;  %v1077_v0 = vand.u32 2147483648, %v2982_v6  ;;  %v1075_v2 = vand.u32 2147483647, %v2982_v6  ;;  %vm1071_vm2 = vweird.f32 %v2982_v6 }
 0x433   :  { %v734_v12 = vsel %vm733_vm4, %v2140_v31, %v730_v3  ;;  %v1237_v44 = vmul.f32 %v2989_v16, %v2962_v39  ;;  %v1425_v3 = vadd.f32 %v2968_v56, %v1424_v25  ;;  %vm1426_vm4 = vweird.f32 %v2895_v26 }
 0x434   :  { %v739_v59 = vsel %vm736_vm6, %v738_v10, %v734_v12  ;;  %v2037_v12 = vunpack.i.h.bf16 %v2939_v46  ;;  %v1078_v57 = vor.u32 1.1754944e-38, %v1077_v0  ;;  %vm1076_vm5 = vcmp.eq.f32.partialorder %v1075_v2, 8.507059e+37  ;;  %vm3059_vm6 = vmor %vm1426_vm4, %vm1427_vm14 }
 0x435   :  { %v740_v22 = vmul.f32 %v2898_v33, %v739_v59  ;;  %v904_v33 = vsel %vm3004_vm9, %v2951_v51, %v900_v11  ;;  %v1095_v51 = vmul.f32 %v2824_v5, %v1094_v19  ;;  %v2041_v5 = vunpack.i.l.bf16 %v2947_v48 }
 0x436   :  { %v2030_v23 = vpop.permute.xlu0 %2029  ;;  %v3014_v53 = vpop.xlane.xlu1 %1401  ;;  %v909_v49 = vsel %vm906_vm12, %v908_v50, %v904_v33  ;;  %v1238_v52 = vsub.f32 1.0, %v1237_v44  ;;  %v2052_v19 = vunpack.i.h.bf16 %v2960_v7  ;;  %v1265_v7 = vmul.f32 %v2839_v28, %v1264_v54 }
 0x437   :  { %v2031_v58 = vunpack.i.l.bf16 %v2030_v23  ;;  %1925 = vmatmul.msk.f32.vlgmr.msrb.gmra.mxu1 %vm317_vm1, %v740_v22  ;;  %2147 = vrcp.f32 %v3014_v53  ;;  %v2032_v32 = vunpack.i.h.bf16 %v2030_v23  ;;  %v910_v47 = vmul.f32 %v2888_v55, %v909_v49 }
 0x438   :  { %v2146_v13 = vpop.eup %2145  ;;  %1119 = vmatpush.msrb.mxu1 %v2026_v24  ;;  %v1239_v48 = vmul.f32 %v2989_v16, %v1238_v52  ;;  %v1432_v55 = vand.u32 2147483648, %v2895_v26  ;;  %v1429_v22 = vsel %vm3059_vm6, %v2968_v56, %v1425_v3  ;;  %vm1242_vm7 = vweird.f32 %v2989_v16 }
 0x439   :  { %v1067_v35 = vmul.f32 %v2146_v13, %v2982_v6  ;;  %v3030_v42 = vpop.xlane.xlu2 %1571  ;;  %1148 = vmatpush.msrb.mxu2 %v2031_v58  ;;  %vm1072_vm15 = vweird.f32 %v2146_v13  ;;  %vm1241_vm9 = vweird.f32 %v2962_v39  ;;  %v1245_v28 = vand.u32 2147483647, %v2962_v39 }
 0x43a   :  { %1120 = vmatpush.msrb.mxu1 %v2027_v17  ;;  %2149 = vrcp.f32 %v3030_v42  ;;  %vm1073_vm3 = vmor %vm1071_vm2, %vm1072_vm15  ;;  %v1240_v26 = vadd.f32 %v2989_v16, %v1239_v48  ;;  %v1433_v38 = vor.u32 1.1754944e-38, %v1432_v55  ;;  %v2046_v33 = vunpack.i.l.bf16 %v2941_v30 }
 0x43b   :  { %v1068_v60 = vsub.f32 1.0, %v1067_v35  ;;  %1149 = vmatpush.msrb.mxu2 %v2032_v32  ;;  %vm1243_vm10 = vmor %vm1241_vm9, %vm1242_vm7  ;;  %v2047_v17 = vunpack.i.h.bf16 %v2941_v30  ;;  %v1248_v39 = vor.u32 1.1754944e-38, %v1247_v18  ;;  %vm1246_vm11 = vcmp.eq.f32.partialorder %v1245_v28, 8.507059e+37  ;;  %v1754_v28 = vld [vmem:[#allocation11 + $0x78] sm:$0xff] }
 0x43c   :  { %1942 = vmatmul.msk.f32.vlgmr.msrb.gmra.mxu2 %vm317_vm1, %v1095_v51  ;;  %v1434_v23 = vsel %vm1431_vm8, %v1433_v38, %v1429_v22  ;;  %v1244_v44 = vsel %vm1243_vm10, %v2989_v16, %v1240_v26  ;;  %v1417_v51 = vand.u32 2147483648, %v3014_v53  ;;  %vm1411_vm13 = vweird.f32 %v3014_v53  ;;  %1759 = vmatpush.msrb.mxu3 %v1754_v28  ;;  %v1842_v28 = vld [vmem:[#allocation14 + $0x78] sm:$0xff] }
 0x43d   :  { %v1069_v14 = vmul.f32 %v2146_v13, %v1068_v60  ;;  %1318 = vmatpush.msra.mxu2 %v2041_v5  ;;  %v3041_v34 = vpop.eup %2147  ;;  %v1249_v31 = vsel %vm1246_vm11, %v1248_v39, %v1244_v44  ;;  %v1415_v30 = vand.u32 2147483647, %v3014_v53  ;;  %v1587_v52 = vand.u32 2147483648, %v3030_v42  ;;  %v1749_v44 = vld [vmem:[#allocation11 + $0x50] sm:$0xff] }
 0x43e   :  { %v1407_v11 = vmul.f32 %v3041_v34, %v3014_v53  ;;  %vm1412_vm12 = vweird.f32 %v3041_v34  ;;  %v1250_v21 = vmul.f32 %v2905_v43, %v1249_v31  ;;  %v1418_v4 = vor.u32 1.1754944e-38, %v1417_v51  ;;  %v1745_v39 = vld [vmem:[#allocation11 + $0x30] sm:$0xff]  ;;  %v1744_v31 = vld [vmem:[#allocation11 + $0x28] sm:$0xff] }
 0x43f   :  { %v1070_v10 = vadd.f32 %v2146_v13, %v1069_v14  ;;  %1319 = vmatpush.msra.mxu2 %v2042_v62  ;;  %1933 = vmatmul.msk.f32.vlgmr.msra.gmra.mxu1 %vm317_vm1, %v910_v47  ;;  %vm1413_vm14 = vmor %vm1411_vm13, %vm1412_vm12  ;;  %vm1416_vm15 = vcmp.eq.f32.partialorder %v1415_v30, 8.507059e+37  ;;  %v1585_v43 = vand.u32 2147483647, %v3030_v42  ;;  %v1588_v54 = vor.u32 1.1754944e-38, %v1587_v52  ;;  %v1740_v51 = vld [vmem:[#allocation11 + $0x8] sm:$0xff]  ;;  %v1739_v30 = vld [vmem:[#allocation11] sm:$0xff] }
 0x440   :  { %1289 = vmatpush.msra.mxu1 %v2036_v8  ;;  %v1408_v24 = vsub.f32 1.0, %v1407_v11  ;;  %v2150_v29 = vpop.eup %2149  ;;  %v641_v8 = vpop.f32.mrf.mxu2  ;;  %vm1722_vm10 = vcmask 261120   ;;  %vm1725_vm11 = vcmask 392192   ;;  %vm1730_vm12 = vcmask 654336  }
 0x441   :  { %1488 = vmatpush.msrb.mxu2 %v2051_v9  ;;  %v1074_v6 = vsel %vm1073_vm3, %v2146_v13, %v1070_v10  ;;  %v2060_v59 = vpop.permute.xlu2 %2059  ;;  %v1577_v13 = vmul.f32 %v2150_v29, %v3030_v42  ;;  %vm1582_vm2 = vweird.f32 %v2150_v29  ;;  %vm1581_vm3 = vweird.f32 %v3030_v42 }
 0x442   :  { %v1079_v61 = vsel %vm1076_vm5, %v1078_v57, %v1074_v6  ;;  %v2061_v46 = vunpack.i.l.bf16 %v2060_v59  ;;  %1290 = vmatpush.msra.mxu1 %v2037_v12  ;;  %v2062_v36 = vunpack.i.h.bf16 %v2060_v59  ;;  %v1409_v58 = vmul.f32 %v3041_v34, %v1408_v24  ;;  %vm1583_vm4 = vmor %vm1581_vm3, %vm1582_vm2 }
 0x443   :  { %1489 = vmatpush.msrb.mxu2 %v2052_v19  ;;  %v1080_v56 = vmul.f32 %v2911_v63, %v1079_v61  ;;  %v1435_v63 = vmul.f32 %v2848_v27, %v1434_v23  ;;  %v1578_v16 = vsub.f32 1.0, %v1577_v13  ;;  %vm1586_vm5 = vcmp.eq.f32.partialorder %v1585_v43, 8.507059e+37  ;;  %v1751_v23 = vld [vmem:[#allocation11 + $0x60] sm:$0xff] }
 0x444   :  { %1950 = vmatmul.msk.f32.vlgmr.msra.gmra.mxu2 %vm317_vm1, %v1265_v7  ;;  %v1410_v50 = vadd.f32 %v3041_v34, %v1409_v58  ;;  %v1748_v58 = vld [vmem:[#allocation11 + $0x48] sm:$0xff]  ;;  %v1747_v13 = vld [vmem:[#allocation11 + $0x40] sm:$0xff]  ;;  %vm1733_vm13 = vcmask 785408  }
 0x445   :  { %1658 = vmatpush.msra.mxu2 %v2061_v46  ;;  %v1579_v32 = vmul.f32 %v2150_v29, %v1578_v16  ;;  %v1741_v16 = vld [vmem:[#allocation11 + $0x10] sm:$0xff] }
 0x446   :  { %v1414_v35 = vsel %vm1413_vm14, %v3041_v34, %v1410_v50  ;;  %v1742_v50 = vld [vmem:[#allocation11 + $0x18] sm:$0xff]  ;;  %vm1736_vm14 = vcmask 916480  }
 0x447   :  { %1659 = vmatpush.msra.mxu2 %v2062_v36  ;;  %1941 = vmatmul.msk.f32.vlgmr.msrb.gmra.mxu1 %vm317_vm1, %v1080_v56  ;;  %v1419_v49 = vsel %vm1416_vm15, %v1418_v4, %v1414_v35  ;;  %v1580_v5 = vadd.f32 %v2150_v29, %v1579_v32  ;;  %v1753_v36 = vld [vmem:[#allocation11 + $0x70] sm:$0xff]  ;;  %v1752_v56 = vld [vmem:[#allocation11 + $0x68] sm:$0xff]  ;;  %v1797_v35 = vld [vmem:[#allocation13 + $0x78] sm:$0xff] }
 0x448   :  { %1459 = vmatpush.msrb.mxu1 %v2046_v33  ;;  %v1420_v53 = vmul.f32 %v2915_v1, %v1419_v49  ;;  %v811_v19 = vpop.f32.mrf.mxu2  ;;  %1760 = vmatpush.msrb.mxu3 %v1753_v36  ;;  %v1750_v33 = vld [vmem:[#allocation11 + $0x58] sm:$0xff]  ;;  %v1796_v32 = vld [vmem:[#allocation13 + $0x70] sm:$0xff]  ;;  %v1794_v49 = vld [vmem:[#allocation13 + $0x60] sm:$0xff] }
 0x449   :  { %v1584_v60 = vsel %vm1583_vm4, %v2150_v29, %v1580_v5  ;;  %1802 = vmatpush.msrb.mxu0 %v1797_v35  ;;  %v1793_v5 = vld [vmem:[#allocation13 + $0x58] sm:$0xff]  ;;  %v1841_v36 = vld [vmem:[#allocation14 + $0x70] sm:$0xff] }
 0x44a   :  { %1460 = vmatpush.msrb.mxu1 %v2047_v17  ;;  %v1589_v62 = vsel %vm1586_vm5, %v1588_v54, %v1584_v60  ;;  %1761 = vmatpush.msrb.mxu3 %v1752_v56  ;;  %v1746_v17 = vld [vmem:[#allocation11 + $0x38] sm:$0xff]  ;;  %v1791_v54 = vld [vmem:[#allocation13 + $0x48] sm:$0xff] }
 0x44b   :  { %v1590_v0 = vmul.f32 %v2919_v40, %v1589_v62  ;;  %1803 = vmatpush.msrb.mxu0 %v1796_v32  ;;  %v1840_v56 = vld [vmem:[#allocation14 + $0x68] sm:$0xff]  ;;  %v1829_v32 = vld [vmem:[#allocation14 + $0x10] sm:$0xff] }
 0x44c   :  { %1958 = vmatmul.msk.f32.vlgmr.msrb.gmra.mxu2 %vm317_vm1, %v1435_v63  ;;  %1762 = vmatpush.msrb.mxu3 %v1751_v23  ;;  %v1743_v63 = vld [vmem:[#allocation11 + $0x20] sm:$0xff] }
 0x44d   :  { %v1839_v23 = vld [vmem:[#allocation14 + $0x60] sm:$0xff] }
 0x44e   :  { %v2055_v27 = vpop.permute.xlu1 %2054  ;;  %1763 = vmatpush.msrb.mxu3 %v1750_v33  ;;  %v1838_v33 = vld [vmem:[#allocation14 + $0x58] sm:$0xff] }
 0x44f   :  { %1949 = vmatmul.msk.f32.vlgmr.msra.gmra.mxu1 %vm317_vm1, %v1250_v21  ;;  %v2056_v25 = vunpack.i.l.bf16 %v2055_v27  ;;  %v2057_v45 = vunpack.i.h.bf16 %v2055_v27  ;;  %v1795_v27 = vld [vmem:[#allocation13 + $0x68] sm:$0xff] }
 0x450   :  { %v981_v59 = vpop.f32.mrf.mxu2  ;;  %1764 = vmatpush.msrb.mxu3 %v1749_v44  ;;  %1804 = vmatpush.msrb.mxu0 %v1795_v27  ;;  %v1837_v44 = vld [vmem:[#allocation14 + $0x50] sm:$0xff]  ;;  %v1828_v27 = vld [vmem:[#allocation14 + $0x8] sm:$0xff] }
 0x451   :  { %1629 = vmatpush.msra.mxu1 %v2056_v25 }
 0x452   :  { %1765 = vmatpush.msrb.mxu3 %v1748_v58  ;;  %1805 = vmatpush.msrb.mxu0 %v1794_v49  ;;  %v1836_v58 = vld [vmem:[#allocation14 + $0x48] sm:$0xff] }
 0x453   :  { %1630 = vmatpush.msra.mxu1 %v2057_v45 }
 0x454   :  { %1766 = vmatpush.msrb.mxu3 %v1747_v13  ;;  %1806 = vmatpush.msrb.mxu0 %v1793_v5  ;;  %v1835_v13 = vld [vmem:[#allocation14 + $0x40] sm:$0xff] }
 0x456   :  { %1767 = vmatpush.msrb.mxu3 %v1746_v17  ;;  %v1834_v17 = vld [vmem:[#allocation14 + $0x38] sm:$0xff] }
 0x457   :  { %1957 = vmatmul.msk.f32.vlgmr.msrb.gmra.mxu1 %vm317_vm1, %v1420_v53  ;;  %v1792_v53 = vld [vmem:[#allocation13 + $0x50] sm:$0xff] }
 0x458   :  { %1768 = vmatpush.msrb.mxu3 %v1745_v39  ;;  %1807 = vmatpush.msrb.mxu0 %v1792_v53  ;;  %v2086_v39 = vld [vmem:[%s3149_s9] ss:$0 sm:$0xff] }
 0x459   :  { %1847 = vmatpush.msrb.mxu1 %v1842_v28 }
 0x45a   :  { %1769 = vmatpush.msrb.mxu3 %v1744_v31  ;;  %1808 = vmatpush.msrb.mxu0 %v1791_v54  ;;  %v1833_v31 = vld [vmem:[#allocation14 + $0x30] sm:$0xff] }
 0x45b   :  { %1848 = vmatpush.msrb.mxu1 %v1841_v36 }
 0x45c   :  { %1770 = vmatpush.msrb.mxu3 %v1743_v63 }
 0x45d   :  { %1849 = vmatpush.msrb.mxu1 %v1840_v56 }
 0x45e   :  { %1771 = vmatpush.msrb.mxu3 %v1742_v50  ;;  %v1832_v50 = vld [vmem:[#allocation14 + $0x28] sm:$0xff] }
 0x45f   :  { %1965 = vmatmul.msk.f32.vlgmr.msra.gmra.mxu1 %vm317_vm1, %v1590_v0 }
 0x460   :  { %1772 = vmatpush.msrb.mxu3 %v1741_v16  ;;  %1850 = vmatpush.msrb.mxu1 %v1839_v23 }
 0x461   :  { %v1575_v14 = vpop.xlane.xlu0 %1574 }
 0x462   :  { %2151 = vrcp.f32 %v1575_v14  ;;  %v1602_v3 = vand.u32 2147483648, %v1575_v14  ;;  %v1600_v1 = vand.u32 2147483647, %v1575_v14  ;;  %vm1596_vm7 = vweird.f32 %v1575_v14  ;;  %1773 = vmatpush.msrb.mxu3 %v1740_v51  ;;  %1851 = vmatpush.msrb.mxu1 %v1838_v33  ;;  %v1831_v51 = vld [vmem:[#allocation14 + $0x20] sm:$0xff] }
 0x464   :  { %v1603_v10 = vor.u32 1.1754944e-38, %v1602_v3  ;;  %vm1601_vm9 = vcmp.eq.f32.partialorder %v1600_v1, 8.507059e+37  ;;  %1774 = vmatpush.msrb.mxu3 %v1739_v30  ;;  %v1789_v3 = vld [vmem:[#allocation13 + $0x38] sm:$0xff]  ;;  %v1788_v1 = vld [vmem:[#allocation13 + $0x30] sm:$0xff]  ;;  %1852 = vmatpush.msrb.mxu1 %v1837_v44 }
 0x465   :  { %v1830_v30 = vld [vmem:[#allocation14 + $0x18] sm:$0xff] }
 0x466   :  { %1853 = vmatpush.msrb.mxu1 %v1836_v58 }
 0x468   :  { %v2152_v2 = vpop.eup %2151  ;;  %1854 = vmatpush.msrb.mxu1 %v1835_v13 }
 0x469   :  { %v1592_v47 = vmul.f32 %v2152_v2, %v1575_v14  ;;  %vm1597_vm6 = vweird.f32 %v2152_v2 }
 0x46a   :  { %vm1598_vm8 = vmor %vm1596_vm7, %vm1597_vm6  ;;  %1855 = vmatpush.msrb.mxu1 %v1834_v17 }
 0x46b   :  { %v1593_v34 = vsub.f32 1.0, %v1592_v47  ;;  %v1790_v47 = vld [vmem:[#allocation13 + $0x40] sm:$0xff] }
 0x46c   :  { %1809 = vmatpush.msrb.mxu0 %v1790_v47  ;;  %1856 = vmatpush.msrb.mxu1 %v1833_v31 }
 0x46d   :  { %v1594_v42 = vmul.f32 %v2152_v2, %v1593_v34 }
 0x46e   :  { %1810 = vmatpush.msrb.mxu0 %v1789_v3  ;;  %1857 = vmatpush.msrb.mxu1 %v1832_v50 }
 0x46f   :  { %v1595_v9 = vadd.f32 %v2152_v2, %v1594_v42  ;;  %v610_v48 = vpop.f32.mrf.mxu1 }
 0x470   :  { %v2063_v11 = vpack.i.bf16 %v641_v8, %v610_v48  ;;  %1811 = vmatpush.msrb.mxu0 %v1788_v1  ;;  %1858 = vmatpush.msrb.mxu1 %v1831_v51 }
 0x471   :  { %v1599_v55 = vsel %vm1598_vm8, %v2152_v2, %v1595_v9 }
 0x472   :  { %v1604_v40 = vsel %vm1601_vm9, %v1603_v10, %v1599_v55  ;;  %2064 = vrot.lane.b32.xlu1 %v2063_v11, %s2397_s23  ;;  %v1787_v10 = vld [vmem:[#allocation13 + $0x28] sm:$0xff]  ;;  %1859 = vmatpush.msrb.mxu1 %v1830_v30 }
 0x473   :  { %v1605_v12 = vmul.f32 %v2931_v15, %v1604_v40  ;;  %1812 = vmatpush.msrb.mxu0 %v1787_v10 }
 0x474   :  { %1860 = vmatpush.msrb.mxu1 %v1829_v32 }
 0x475   :  { %1966 = vmatmul.msk.f32.vlgmr.msra.gmra.mxu2 %vm317_vm1, %v1605_v12  ;;  %v1786_v12 = vld [vmem:[#allocation13 + $0x20] sm:$0xff] }
 0x476   :  { %1813 = vmatpush.msrb.mxu0 %v1786_v12  ;;  %1861 = vmatpush.msrb.mxu1 %v1828_v27 }
 0x4b4   :  { %v782_v57 = vpop.f32.mrf.mxu1 }
 0x4b5   :  { %v2068_v6 = vpack.i.bf16 %v811_v19, %v782_v57 }
 0x4b7   :  { %2069 = vrot.lane.b32.xlu0 %v2068_v6, %s2396_s20 }
 0x4bc   :  { %v952_v20 = vpop.f32.mrf.mxu1 }
 0x4bd   :  { %v2073_v61 = vpack.i.bf16 %v981_v59, %v952_v20  ;;  %v1785_v59 = vld [vmem:[#allocation13 + $0x18] sm:$0xff] }
 0x4be   :  { %1814 = vmatpush.msrb.mxu0 %v1785_v59 }
 0x4bf   :  { %v1151_v46 = vpop.f32.mrf.mxu2  ;;  %2074 = vrot.lane.b32.xlu2 %v2073_v61, %s2395_s19  ;;  %v1784_v61 = vld [vmem:[#allocation13 + $0x10] sm:$0xff] }
 0x4c0   :  { %1815 = vmatpush.msrb.mxu0 %v1784_v61 }
 0x4c4   :  { %v1122_v7 = vpop.f32.mrf.mxu1 }
 0x4c5   :  { %v2078_v22 = vpack.i.bf16 %v1151_v46, %v1122_v7 }
 0x4c7   :  { %v1321_v26 = vpop.f32.mrf.mxu2  ;;  %2079 = vrot.lane.b32.xlu1 %v2078_v22, %s2394_s3 }
 0x4c8   :  { %1700 = vrot.lane.b32.xlu0 %v1321_v26, %s2393_s17 }
 0x4cc   :  { %v1292_v15 = vpop.f32.mrf.mxu1 }
 0x4cd   :  { %1698 = vrot.lane.b32.xlu2 %v1292_v15, %s2393_s17 }
 0x4cf   :  { %v1491_v29 = vpop.f32.mrf.mxu2 }
 0x4d4   :  { %v1462_v24 = vpop.f32.mrf.mxu1 }
 0x4d5   :  { %1706 = vrot.lane.b32.xlu1 %v1462_v24, %s2392_s5 }
 0x4dc   :  { %v1632_v38 = vpop.f32.mrf.mxu1 }
 0x4dd   :  { %1708 = vrot.lane.b32.xlu1 %v1491_v29, %s2392_s5  ;;  %1714 = vrot.lane.b32.xlu2 %v1632_v38, %s2391_s16  ;;  %v1783_v38 = vld [vmem:[#allocation13 + $0x8] sm:$0xff] }
 0x4de   :  { %1816 = vmatpush.msrb.mxu0 %v1783_v38 }
 0x4e4   :  { %v2065_v21 = vpop.permute.xlu1 %2064 }
 0x4e5   :  { %v2066_v45 = vunpack.i.l.bf16 %v2065_v21 }
 0x4e7   :  { %v1720_v60 = vsel %vm317_vm1, %v2802_v37, %v2066_v45  ;;  %v2067_v37 = vunpack.i.h.bf16 %v2065_v21 }
 0x4e9   :  { %v1721_v19 = vsel %vm317_vm1, %v2808_v41, %v2067_v37 }
 0x4f8   :  { %v1661_v18 = vpop.f32.mrf.mxu2 }
 0x4f9   :  { %1716 = vrot.lane.b32.xlu2 %v1661_v18, %s2391_s16  ;;  %v1782_v18 = vld [vmem:[#allocation13] sm:$0xff] }
 0x4fa   :  { %1817 = vmatpush.msrb.mxu0 %v1782_v18 }
 0x519   :  { %v2075_v4 = vpop.permute.xlu2 %2074 }
 0x51a   :  { %v2076_v2 = vunpack.i.l.bf16 %v2075_v4  ;;  %v2077_v20 = vunpack.i.h.bf16 %v2075_v4  ;;  %v1827_v4 = vld [vmem:[#allocation14] sm:$0xff] }
 0x51b   :  { %1862 = vmatpush.msrb.mxu1 %v1827_v4 }
 0x527   :  { %v1699_v62 = vpop.permute.xlu2 %1698 }
 0x529   :  { %v2070_v25 = vpop.permute.xlu0 %2069 }
 0x52a   :  { %v2071_v52 = vunpack.i.l.bf16 %v2070_v25  ;;  %v2072_v8 = vunpack.i.h.bf16 %v2070_v25  ;;  %v2087_v25 = vld [vmem:[%s3151_s11] ss:$0 sm:$0xff]  ;;  %s1878_s11 = sshll.u32 %s3154_s14, 4  ;;  %s1879_s11 = int_to_ptr.hbm [resolvable:$true] %s1878_s11 }
 0x52c   :  { %v1723_v0 = vsel %vm1722_vm10, %v1720_v60, %v2071_v52  ;;  %v1724_v57 = vsel %vm1722_vm10, %v1721_v19, %v2072_v8  ;;  %v2088_v60 = vld [vmem:[%s3153_s13] ss:$0 sm:$0xff] }
 0x52d   :  { %v1726_v34 = vsel %vm1725_vm11, %v1723_v0, %v2076_v2  ;;  %v1727_v46 = vsel %vm1725_vm11, %v1724_v57, %v2077_v20 }
 0x537   :  { %v1715_v11 = vpop.permute.xlu2 %1714 }
 0x539   :  { %v2080_v43 = vpop.permute.xlu1 %2079 }
 0x53a   :  { %v2081_v14 = vunpack.i.l.bf16 %v2080_v43  ;;  %v2082_v6 = vunpack.i.h.bf16 %v2080_v43  ;;  %v1701_v26 = vpop.permute.xlu0 %1700 }
 0x53c   :  { %v1728_v42 = vsel %vm234_vm0, %v1726_v34, %v2081_v14  ;;  %v1729_v7 = vsel %vm234_vm0, %v1727_v46, %v2082_v6 }
 0x53d   :  { %v1731_v9 = vsel %vm1730_vm12, %v1728_v42, %v1699_v62  ;;  %v1732_v15 = vsel %vm1730_vm12, %v1729_v7, %v1701_v26 }
 0x547   :  { %v1707_v48 = vpop.permute.xlu1 %1706 }
 0x548   :  { %v1734_v55 = vsel %vm1733_vm13, %v1731_v9, %v1707_v48 }
 0x549   :  { %v1737_v40 = vsel %vm1736_vm14, %v1734_v55, %v1715_v11 }
 0x54a   :  { %1775 = vmatmul.f32.vlgmr.msrb.gmra.mxu3 %v1737_v40 }
 0x54f   :  { %v1709_v22 = vpop.permute.xlu1 %1708 }
 0x550   :  { %v1735_v41 = vsel %vm1733_vm13, %v1732_v15, %v1709_v22 }
 0x553   :  { %v1717_v24 = vpop.permute.xlu2 %1716 }
 0x554   :  { %v1738_v29 = vsel %vm1736_vm14, %v1735_v41, %v1717_v24 }
 0x555   :  { %1778 = vmatmul.f32.gmra.mxu3 %v1738_v29 }
 0x5cd   :  { %v1776_v63 = vpop.f32.mrf.mxu3 }
 0x5ce   :  { %v1777_v16 = vadd.f32 %v2086_v39, %v1776_v63 }
 0x5d0   :  { %1818 = vmatmul.f32.vlgmr.msrb.gmra.mxu0 %v1777_v16 }
 0x5d8   :  { %v1779_v21 = vpop.f32.mrf.mxu3 }
 0x5d9   :  { %v1780_v35 = vadd.f32 %v2086_v39, %v1779_v21 }
 0x5db   :  { %1821 = vmatmul.f32.gmra.mxu0 %v1780_v35 }
 0x64d   :  { %v1819_v49 = vpop.f32.mrf.mxu0 }
 0x64e   :  { %v1820_v45 = vadd.f32 %v2087_v25, %v1819_v49 }
 0x650   :  { %v1825_v5 = vmax.f32 %v1820_v45, 0.0 }
 0x652   :  { %1863 = vmatmul.f32.vlgmr.msrb.gmra.mxu1 %v1825_v5 }
 0x658   :  { %v1822_v52 = vpop.f32.mrf.mxu0 }
 0x659   :  { %v1823_v43 = vadd.f32 %v2087_v25, %v1822_v52 }
 0x65b   :  { %v1826_v53 = vmax.f32 %v1823_v43, 0.0 }
 0x65d   :  { %1866 = vmatmul.f32.gmra.mxu1 %v1826_v53 }
 0x6cf   :  { %v1864_v54 = vpop.f32.mrf.mxu1 }
 0x6d0   :  { %v1865_v62 = vadd.f32 %v2088_v60, %v1864_v54 }
 0x6d2   :  { %1870 = vst [vmem:[#allocation16] sm:$0xff] %v1865_v62 }
 0x6da   :  { %v1867_v0 = vpop.f32.mrf.mxu1 }
 0x6db   :  { %v1868_v14 = vadd.f32 %v2088_v60, %v1867_v0 }
 0x6dd   :  { %1871 = vst [vmem:[#allocation16 + $0x8] sm:$0xff] %v1868_v14 }
 0x6de   :  { %1884 = dma.vmem_to_hbm [thread:$0]  %s1877_s27, 256, %s1879_s11, [#allocation4], %s2382_s21, %s2382_s21, %s2383_s22  }
 0x6df   :  { %2379 = dma.done.wait [#allocation4], 256  }
 0x6e0   :  { %2380 = vsyncadd [#allocation4], 4294967040 }
 0x6e1   :  { %1889 = vsyncpa [#allocation3], 1 }
 0x6e2   :  { %1890 = vsyncpa [#allocation6], 1 }
 0x6e3   :  { %1891 = vsyncpa [#allocation9], 1 }
 0x6e4   :  { %1892 = vsyncpa [#allocation12], 1 }
 0x6e5   :  { %1893 = vsyncpa [#allocation15], 1 }
 0x6e6   :  { %1894 = vsyncpa [#allocation4], 1 }

</bundles_post_ra>
